<compile_context>
chip_gen: v5e
topology: v5e:2x2
jax: 0.10.0
libtpu: 0.0.40
codegen_flags: <defaults>
</compile_context>

<pallas_src>
import jax
import jax.numpy as jnp
from jax.experimental import pallas as pl
from jax.experimental.pallas import tpu as pltpu


def _lstm_step(pre, c, G):
    """One LSTM cell update. `pre` is the (B, 4G) pre-activation with gate
    order i, f, g, o (gate width G).  Nonlinearities run full-width once; the
    four gates are static lane slices."""
    sig = jax.nn.sigmoid(pre)
    th = jnp.tanh(pre)
    i = sig[:, 0 * G:1 * G]
    f = sig[:, 1 * G:2 * G]
    g = th[:, 2 * G:3 * G]
    o = sig[:, 3 * G:4 * G]
    c_new = f * c + i * g
    h_new = o * jnp.tanh(c_new)
    return h_new, c_new


def vae_kernel(
    # data (time-major, flattened, batch padded to the sublane tile)
    tok_ref, tokr_ref, tgt_ref, eps_ref,
    # fused bidirectional encoder (gate-interleaved layout)
    w_enc_ref, b_enc_ref, whh_enc_ref,
    # latent heads on [h_fwd | h_bwd] (lane-padded L)
    wmu_ref, b_mu_ref, wlv_ref, b_lv_ref,
    # decoder
    wdi_ref, b_di_ref,
    w_de_ref, wih_dz_ref, b_d_ref, whh_d_ref,
    wout_ref, b_out_ref,
    # outputs
    recon_ref, mu_ref, logvar_ref,
    # scratch
    h_dec,
):
    f32, bf16 = jnp.float32, jnp.bfloat16
    SB = tok_ref.shape[0]
    B = eps_ref.shape[0]
    S = SB // B
    H = whh_d_ref.shape[0]
    H2 = 2 * H
    V = w_de_ref.shape[0]
    V2 = w_enc_ref.shape[0]          # 2V

    # --- Input-gate slabs for ALL timesteps via batched matmuls -------------
    # Encoder: one-hot over 2V lanes — fwd token at [0,V), time-reversed bwd
    # token (pre-offset by +V in the wrapper) at [V,2V) — hits the
    # gate-interleaved fused (2V, 8H) table.
    iota2 = jax.lax.broadcasted_iota(jnp.int32, (SB, V2), 1)
    oh_enc = ((iota2 == tok_ref[...]) | (iota2 == tokr_ref[...])).astype(bf16)
    gates_enc = (jnp.dot(oh_enc, w_enc_ref[...], preferred_element_type=f32)
                 + b_enc_ref[...])                       # (SB, 8H) f32

    iota1 = jax.lax.broadcasted_iota(jnp.int32, (SB, V), 1)
    oh_dec = (iota1 == tgt_ref[...]).astype(bf16)        # (SB, V)

    # --- Fused bidirectional encoder recurrence (one matmul per step) -------
    whh_enc = whh_enc_ref[...]
    h = jnp.zeros((B, H2), f32)
    c = jnp.zeros((B, H2), f32)
    # S is small & static; live set is tiny at B=8, so full unroll keeps
    # cross-step scheduler visibility without spilling.
    for t in range(S):
        pre = (gates_enc[t * B:(t + 1) * B, :]
               + jnp.dot(h.astype(bf16), whh_enc, preferred_element_type=f32))
        h, c = _lstm_step(pre, c, H2)
    # h == [h_fwd | h_bwd]  (B, 2H): exactly the concat fc_mu/fc_logvar expect.

    # --- fc_mu / fc_logvar (lane-dense Lp=128 outputs) -----------------------
    hb = h.astype(bf16)
    mu = jnp.dot(hb, wmu_ref[...], preferred_element_type=f32) + b_mu_ref[...]
    logvar = jnp.dot(hb, wlv_ref[...], preferred_element_type=f32) + b_lv_ref[...]
    mu_ref[...] = mu
    logvar_ref[...] = logvar

    # --- Reparameterize: z = mu + eps * exp(0.5 * logvar) (pad lanes stay 0) -
    z = mu + eps_ref[...] * jnp.exp(0.5 * logvar)
    zb = z.astype(bf16)

    # --- Decoder LSTM (teacher forcing); z-gate term folded into the slab ----
    h_d = jnp.dot(zb, wdi_ref[...], preferred_element_type=f32) + b_di_ref[...]
    c_d = jnp.zeros_like(h_d)
    z_gates = (jnp.dot(zb, wih_dz_ref[...], preferred_element_type=f32)
               + b_d_ref[...])                           # (B, 4H)
    gates_dec = (jnp.dot(oh_dec, w_de_ref[...], preferred_element_type=f32)
                 + jnp.concatenate([z_gates] * S, axis=0))  # (SB, 4H)
    whh_d = whh_d_ref[...]
    # TODO(synk): on v5e/v6e, hold whh_enc / whh_d MXU-resident across the
    # unrolled steps via pltpu.matmul_push_rhs/matmul_acc_lhs/matmul_pop if
    # the bundle dump shows per-step RHS re-pushes.
    for t in range(S):
        pre = (gates_dec[t * B:(t + 1) * B, :]
               + jnp.dot(h_d.astype(bf16), whh_d, preferred_element_type=f32))
        h_d, c_d = _lstm_step(pre, c_d, H)
        h_dec[t * B:(t + 1) * B, :] = h_d                # only the recurrence stays serial

    # --- Hoisted, lane-dense output projection (one (SB,H)@(H,Vp) matmul) ---
    recon_ref[...] = (jnp.dot(h_dec[...].astype(bf16), wout_ref[...],
                              preferred_element_type=f32) + b_out_ref[...])


def _interleave_gates(fwd, bwd, H):
    """Interleave two [i,f,g,o]-ordered 4H column blocks into the fused layout
    [i_f, i_b, f_f, f_b, g_f, g_b, o_f, o_b] (last-axis width 8H)."""
    parts = []
    for g in range(4):
        parts.append(fwd[..., g * H:(g + 1) * H])
        parts.append(bwd[..., g * H:(g + 1) * H])
    return jnp.concatenate(parts, axis=-1)


def molecular_vae_forward(tokens, target_seq, eps, params):
    """tokens, target_seq: (B, S) int32; eps: (B, latent) f32.

    Returns (recon (B, S, V), mu (B, L), logvar (B, L)) — same as the PyTorch
    module's forward(x, target_seq) with eps standing in for randn_like.
    """
    B, S = tokens.shape
    (emb_w,
     wih_f, whh_f, b_f,
     wih_b, whh_b, b_b,
     wmu_f, wmu_b, b_mu,
     wlv_f, wlv_b, b_lv,
     wdi, b_di,
     wih_de, wih_dz, whh_d, b_d,
     wout, b_out) = params
    V, E = emb_w.shape
    H = whh_f.shape[0]
    L = wmu_f.shape[1]

    LANE, SUB = 128, 8
    Bp = max(SUB, ((B + SUB - 1) // SUB) * SUB)       # sublane-tile batch
    Lp = ((L + LANE - 1) // LANE) * LANE              # lane-dense latent dim
    Vp = ((V + LANE - 1) // LANE) * LANE              # lane-dense vocab (output)
    SBp = S * Bp
    f32, bf16 = jnp.float32, jnp.bfloat16

    def pad2(x, rows, cols):
        return jnp.pad(x, ((0, rows - x.shape[0]), (0, cols - x.shape[1])))

    # ---- Encoder: embedding x W_ih fusion + fwd/bwd gate interleave --------
    w_ef = jnp.dot(emb_w, wih_f)                      # (V, 4H) fwd fused table
    w_eb = jnp.dot(emb_w, wih_b)                      # (V, 4H) bwd fused table
    zV = jnp.zeros_like(w_ef)
    w_enc = jnp.concatenate([_interleave_gates(w_ef, zV, H),
                             _interleave_gates(zV, w_eb, H)], axis=0)   # (2V, 8H)
    b_enc = _interleave_gates(b_f, b_b, H)            # (1, 8H)
    zH = jnp.zeros_like(whh_f)
    whh_enc = jnp.concatenate([_interleave_gates(whh_f, zH, H),
                               _interleave_gates(zH, whh_b, H)], axis=0)  # (2H, 8H)

    # ---- Latent heads over [h_fwd | h_bwd], lane-padded to Lp ---------------
    wmu = pad2(jnp.concatenate([wmu_f, wmu_b], axis=0), 2 * H, Lp)      # (2H, Lp)
    wlv = pad2(jnp.concatenate([wlv_f, wlv_b], axis=0), 2 * H, Lp)
    b_mu_p = pad2(b_mu, 1, Lp)
    b_lv_p = pad2(b_lv, 1, Lp)

    # ---- Decoder (z rows padded to Lp, output cols padded to Vp) ------------
    wdi_p = pad2(wdi, Lp, H)
    wih_dz_p = pad2(wih_dz, Lp, 4 * H)
    w_de = jnp.dot(emb_w, wih_de)                     # (V, 4H) decoder fused table
    wout_p = pad2(wout, H, Vp)
    b_out_p = pad2(b_out, 1, Vp)

    # ---- Data: pad batch to the sublane tile, flatten time-major ------------
    tok_p = jnp.pad(tokens.astype(jnp.int32), ((0, Bp - B), (0, 0)))
    tgt_p = jnp.pad(target_seq.astype(jnp.int32), ((0, Bp - B), (0, 0)))
    tok_flat = jnp.transpose(tok_p).reshape(SBp, 1)
    tokr_flat = (jnp.transpose(jnp.flip(tok_p, axis=1)) + V).reshape(SBp, 1)
    tgt_flat = jnp.transpose(tgt_p).reshape(SBp, 1)
    eps_p = jnp.pad(eps.astype(f32), ((0, Bp - B), (0, Lp - L)))

    vmem = pl.BlockSpec(memory_space=pltpu.MemorySpace.VMEM)
    recon_flat, mu_p, logvar_p = pl.pallas_call(
        vae_kernel,
        out_shape=(
            jax.ShapeDtypeStruct((SBp, Vp), f32),
            jax.ShapeDtypeStruct((Bp, Lp), f32),
            jax.ShapeDtypeStruct((Bp, Lp), f32),
        ),
        in_specs=[vmem] * 19,
        out_specs=(vmem, vmem, vmem),
        scratch_shapes=[pltpu.VMEM((SBp, H), f32)],   # decoder hidden states
    )(tok_flat, tokr_flat, tgt_flat, eps_p,
      w_enc.astype(bf16), b_enc.astype(f32), whh_enc.astype(bf16),
      wmu.astype(bf16), b_mu_p.astype(f32), wlv.astype(bf16), b_lv_p.astype(f32),
      wdi_p.astype(bf16), b_di.astype(f32),
      w_de.astype(bf16), wih_dz_p.astype(bf16), b_d.astype(f32), whh_d.astype(bf16),
      wout_p.astype(bf16), b_out_p.astype(f32))

    # Back to PyTorch's batch-first layout and strip the padding.
    recon = jnp.transpose(recon_flat.reshape(S, Bp, Vp)[:, :B, :V], (1, 0, 2))
    return recon, mu_p[:B, :L], logvar_p[:B, :L]


def init_params(key, V, E, H, L):
    """Deterministic synthetic parameters with the module's shapes (pre-transposed)."""
    ks = jax.random.split(key, 21)

    def w(k, shape, scale=0.1):
        return (scale * jax.random.normal(k, shape)).astype(jnp.float32)

    return (
        w(ks[0], (V, E)),            # embedding table
        w(ks[1], (E, 4 * H)),        # enc LSTM fwd: W_ih^T
        w(ks[2], (H, 4 * H)),        # enc LSTM fwd: W_hh^T
        w(ks[3], (1, 4 * H)),        # enc LSTM fwd: b_ih + b_hh
        w(ks[4], (E, 4 * H)),        # enc LSTM bwd: W_ih^T
        w(ks[5], (H, 4 * H)),        # enc LSTM bwd: W_hh^T
        w(ks[6], (1, 4 * H)),        # enc LSTM bwd: bias
        w(ks[7], (H, L)),            # fc_mu weight (fwd half of 2H)
        w(ks[8], (H, L)),            # fc_mu weight (bwd half of 2H)
        w(ks[9], (1, L)),            # fc_mu bias
        w(ks[10], (H, L)),           # fc_logvar weight (fwd half)
        w(ks[11], (H, L)),           # fc_logvar weight (bwd half)
        w(ks[12], (1, L)),           # fc_logvar bias
        w(ks[13], (L, H)),           # decoder_input weight^T
        w(ks[14], (1, H)),           # decoder_input bias
        w(ks[15], (E, 4 * H)),       # dec LSTM W_ih^T (embedding part)
        w(ks[16], (L, 4 * H)),       # dec LSTM W_ih^T (latent part)
        w(ks[17], (H, 4 * H)),       # dec LSTM W_hh^T
        w(ks[18], (1, 4 * H)),       # dec LSTM bias
        w(ks[19], (H, V)),           # output_layer weight^T
        w(ks[20], (1, V)),           # output_layer bias
    )


if __name__ == "__main__":
    # Small shapes consistent with the module's forward.
    VOCAB, EMB, HID, LAT = 32, 32, 32, 16
    B, S = 2, 8

    key = jax.random.PRNGKey(0)
    k_params, k_tok, k_eps = jax.random.split(key, 3)

    params = init_params(k_params, VOCAB, EMB, HID, LAT)
    tokens = jax.random.randint(k_tok, (B, S), 0, VOCAB, dtype=jnp.int32)
    eps = jax.random.normal(k_eps, (B, LAT), dtype=jnp.float32)

    # forward(x, target_seq=x): teacher-forced decode path.
    recon, mu, logvar = molecular_vae_forward(tokens, tokens, eps, params)
    jax.block_until_ready((recon, mu, logvar))

    assert recon.shape == (B, S, VOCAB)
    assert mu.shape == (B, LAT)
    assert logvar.shape == (B, LAT)
    assert bool(jnp.all(jnp.isfinite(recon)))
    assert bool(jnp.all(jnp.isfinite(mu)))
    assert bool(jnp.all(jnp.isfinite(logvar)))

    print("KERNEL_OK")
</pallas_src>

<mosaic_0001>
module attributes {stable_mosaic.version = 11 : i64} {
  func.func @vae_kernel(%arg0: memref<64x1xi32, #tpu.memory_space<vmem>>, %arg1: memref<64x1xi32, #tpu.memory_space<vmem>>, %arg2: memref<64x1xi32, #tpu.memory_space<vmem>>, %arg3: memref<8x128xf32, #tpu.memory_space<vmem>>, %arg4: memref<64x256xbf16, #tpu.memory_space<vmem>>, %arg5: memref<1x256xf32, #tpu.memory_space<vmem>>, %arg6: memref<64x256xbf16, #tpu.memory_space<vmem>>, %arg7: memref<64x128xbf16, #tpu.memory_space<vmem>>, %arg8: memref<1x128xf32, #tpu.memory_space<vmem>>, %arg9: memref<64x128xbf16, #tpu.memory_space<vmem>>, %arg10: memref<1x128xf32, #tpu.memory_space<vmem>>, %arg11: memref<128x32xbf16, #tpu.memory_space<vmem>>, %arg12: memref<1x32xf32, #tpu.memory_space<vmem>>, %arg13: memref<32x128xbf16, #tpu.memory_space<vmem>>, %arg14: memref<128x128xbf16, #tpu.memory_space<vmem>>, %arg15: memref<1x128xf32, #tpu.memory_space<vmem>>, %arg16: memref<32x128xbf16, #tpu.memory_space<vmem>>, %arg17: memref<32x128xbf16, #tpu.memory_space<vmem>>, %arg18: memref<1x128xf32, #tpu.memory_space<vmem>>, %arg19: memref<64x128xf32, #tpu.memory_space<vmem>>, %arg20: memref<8x128xf32, #tpu.memory_space<vmem>>, %arg21: memref<8x128xf32, #tpu.memory_space<vmem>>, %arg22: memref<64x32xf32, #tpu.memory_space<vmem>>) attributes {dimension_semantics = [], scalar_prefetch = 0 : i64, scratch_operands = 1 : i64, tpu.core_type = #tpu.core_type<tc>} {
    %0 = tpu.iota {dimensions = array<i32: 1>} : vector<64x64xi32>
    %c0 = arith.constant 0 : index
    %c0_0 = arith.constant 0 : index
    %1 = vector.load %arg0[%c0, %c0_0] : memref<64x1xi32, #tpu.memory_space<vmem>>, vector<64x1xi32>
    %2 = vector.broadcast %1 : vector<64x1xi32> to vector<64x64xi32>
    %3 = arith.cmpi eq, %0, %2 : vector<64x64xi32>
    %c0_1 = arith.constant 0 : index
    %c0_2 = arith.constant 0 : index
    %4 = vector.load %arg1[%c0_1, %c0_2] : memref<64x1xi32, #tpu.memory_space<vmem>>, vector<64x1xi32>
    %5 = vector.broadcast %4 : vector<64x1xi32> to vector<64x64xi32>
    %6 = arith.cmpi eq, %0, %5 : vector<64x64xi32>
    %7 = arith.ori %3, %6 : vector<64x64xi1>
    %8 = arith.extui %7 : vector<64x64xi1> to vector<64x64xi32>
    %9 = arith.sitofp %8 : vector<64x64xi32> to vector<64x64xf32>
    %10 = arith.truncf %9 : vector<64x64xf32> to vector<64x64xbf16>
    %c0_3 = arith.constant 0 : index
    %c0_4 = arith.constant 0 : index
    %11 = vector.load %arg4[%c0_3, %c0_4] : memref<64x256xbf16, #tpu.memory_space<vmem>>, vector<64x256xbf16>
    %cst = arith.constant dense<0.000000e+00> : vector<64x256xf32>
    %12 = tpu.matmul %10, %11, %cst {dimension_numbers = #tpu.dot_dimension_numbers<[1], [0], [0], [1], [0, 0, 1, 1], [], []>} : vector<64x64xbf16>, vector<64x256xbf16>, vector<64x256xf32> -> vector<64x256xf32>
    %c0_5 = arith.constant 0 : index
    %c0_6 = arith.constant 0 : index
    %13 = vector.load %arg5[%c0_5, %c0_6] : memref<1x256xf32, #tpu.memory_space<vmem>>, vector<1x256xf32>
    %14 = vector.broadcast %13 : vector<1x256xf32> to vector<64x256xf32>
    %15 = arith.addf %12, %14 : vector<64x256xf32>
    %16 = tpu.iota {dimensions = array<i32: 1>} : vector<64x32xi32>
    %c0_7 = arith.constant 0 : index
    %c0_8 = arith.constant 0 : index
    %17 = vector.load %arg2[%c0_7, %c0_8] : memref<64x1xi32, #tpu.memory_space<vmem>>, vector<64x1xi32>
    %18 = vector.broadcast %17 : vector<64x1xi32> to vector<64x32xi32>
    %19 = arith.cmpi eq, %16, %18 : vector<64x32xi32>
    %20 = arith.extui %19 : vector<64x32xi1> to vector<64x32xi32>
    %21 = arith.sitofp %20 : vector<64x32xi32> to vector<64x32xf32>
    %22 = arith.truncf %21 : vector<64x32xf32> to vector<64x32xbf16>
    %c0_9 = arith.constant 0 : index
    %c0_10 = arith.constant 0 : index
    %23 = vector.load %arg6[%c0_9, %c0_10] : memref<64x256xbf16, #tpu.memory_space<vmem>>, vector<64x256xbf16>
    %cst_11 = arith.constant 0.000000e+00 : f32
    %24 = vector.broadcast %cst_11 : f32 to vector<8x64xf32>
    %cst_12 = arith.constant 0.000000e+00 : f32
    %25 = vector.broadcast %cst_12 : f32 to vector<8x64xf32>
    %26 = vector.extract_strided_slice %15 {offsets = [0, 0], sizes = [8, 256], strides = [1, 1]} : vector<64x256xf32> to vector<8x256xf32>
    %27 = arith.truncf %24 : vector<8x64xf32> to vector<8x64xbf16>
    %cst_13 = arith.constant dense<0.000000e+00> : vector<8x256xf32>
    %28 = tpu.matmul %27, %23, %cst_13 {dimension_numbers = #tpu.dot_dimension_numbers<[1], [0], [0], [1], [0, 0, 1, 1], [], []>} : vector<8x64xbf16>, vector<64x256xbf16>, vector<8x256xf32> -> vector<8x256xf32>
    %29 = arith.addf %26, %28 : vector<8x256xf32>
    %30 = arith.negf %29 : vector<8x256xf32>
    %31 = math.exp %30 : vector<8x256xf32>
    %cst_14 = arith.constant 1.000000e+00 : f32
    %32 = vector.broadcast %cst_14 : f32 to vector<8x256xf32>
    %33 = arith.addf %32, %31 : vector<8x256xf32>
    %34 = arith.divf %32, %33 : vector<8x256xf32>
    %35 = math.tanh %29 : vector<8x256xf32>
    %36 = vector.extract_strided_slice %34 {offsets = [0, 0], sizes = [8, 64], strides = [1, 1]} : vector<8x256xf32> to vector<8x64xf32>
    %37 = vector.extract_strided_slice %34 {offsets = [0, 64], sizes = [8, 64], strides = [1, 1]} : vector<8x256xf32> to vector<8x64xf32>
    %38 = vector.extract_strided_slice %35 {offsets = [0, 128], sizes = [8, 64], strides = [1, 1]} : vector<8x256xf32> to vector<8x64xf32>
    %39 = vector.extract_strided_slice %34 {offsets = [0, 192], sizes = [8, 64], strides = [1, 1]} : vector<8x256xf32> to vector<8x64xf32>
    %40 = arith.mulf %37, %25 : vector<8x64xf32>
    %41 = arith.mulf %36, %38 : vector<8x64xf32>
    %42 = arith.addf %40, %41 : vector<8x64xf32>
    %43 = math.tanh %42 : vector<8x64xf32>
    %44 = arith.mulf %39, %43 : vector<8x64xf32>
    %45 = vector.extract_strided_slice %15 {offsets = [8, 0], sizes = [8, 256], strides = [1, 1]} : vector<64x256xf32> to vector<8x256xf32>
    %46 = arith.truncf %44 : vector<8x64xf32> to vector<8x64xbf16>
    %cst_15 = arith.constant dense<0.000000e+00> : vector<8x256xf32>
    %47 = tpu.matmul %46, %23, %cst_15 {dimension_numbers = #tpu.dot_dimension_numbers<[1], [0], [0], [1], [0, 0, 1, 1], [], []>} : vector<8x64xbf16>, vector<64x256xbf16>, vector<8x256xf32> -> vector<8x256xf32>
    %48 = arith.addf %45, %47 : vector<8x256xf32>
    %49 = arith.negf %48 : vector<8x256xf32>
    %50 = math.exp %49 : vector<8x256xf32>
    %cst_16 = arith.constant 1.000000e+00 : f32
    %51 = vector.broadcast %cst_16 : f32 to vector<8x256xf32>
    %52 = arith.addf %51, %50 : vector<8x256xf32>
    %53 = arith.divf %51, %52 : vector<8x256xf32>
    %54 = math.tanh %48 : vector<8x256xf32>
    %55 = vector.extract_strided_slice %53 {offsets = [0, 0], sizes = [8, 64], strides = [1, 1]} : vector<8x256xf32> to vector<8x64xf32>
    %56 = vector.extract_strided_slice %53 {offsets = [0, 64], sizes = [8, 64], strides = [1, 1]} : vector<8x256xf32> to vector<8x64xf32>
    %57 = vector.extract_strided_slice %54 {offsets = [0, 128], sizes = [8, 64], strides = [1, 1]} : vector<8x256xf32> to vector<8x64xf32>
    %58 = vector.extract_strided_slice %53 {offsets = [0, 192], sizes = [8, 64], strides = [1, 1]} : vector<8x256xf32> to vector<8x64xf32>
    %59 = arith.mulf %56, %42 : vector<8x64xf32>
    %60 = arith.mulf %55, %57 : vector<8x64xf32>
    %61 = arith.addf %59, %60 : vector<8x64xf32>
    %62 = math.tanh %61 : vector<8x64xf32>
    %63 = arith.mulf %58, %62 : vector<8x64xf32>
    %64 = vector.extract_strided_slice %15 {offsets = [16, 0], sizes = [8, 256], strides = [1, 1]} : vector<64x256xf32> to vector<8x256xf32>
    %65 = arith.truncf %63 : vector<8x64xf32> to vector<8x64xbf16>
    %cst_17 = arith.constant dense<0.000000e+00> : vector<8x256xf32>
    %66 = tpu.matmul %65, %23, %cst_17 {dimension_numbers = #tpu.dot_dimension_numbers<[1], [0], [0], [1], [0, 0, 1, 1], [], []>} : vector<8x64xbf16>, vector<64x256xbf16>, vector<8x256xf32> -> vector<8x256xf32>
    %67 = arith.addf %64, %66 : vector<8x256xf32>
    %68 = arith.negf %67 : vector<8x256xf32>
    %69 = math.exp %68 : vector<8x256xf32>
    %cst_18 = arith.constant 1.000000e+00 : f32
    %70 = vector.broadcast %cst_18 : f32 to vector<8x256xf32>
    %71 = arith.addf %70, %69 : vector<8x256xf32>
    %72 = arith.divf %70, %71 : vector<8x256xf32>
    %73 = math.tanh %67 : vector<8x256xf32>
    %74 = vector.extract_strided_slice %72 {offsets = [0, 0], sizes = [8, 64], strides = [1, 1]} : vector<8x256xf32> to vector<8x64xf32>
    %75 = vector.extract_strided_slice %72 {offsets = [0, 64], sizes = [8, 64], strides = [1, 1]} : vector<8x256xf32> to vector<8x64xf32>
    %76 = vector.extract_strided_slice %73 {offsets = [0, 128], sizes = [8, 64], strides = [1, 1]} : vector<8x256xf32> to vector<8x64xf32>
    %77 = vector.extract_strided_slice %72 {offsets = [0, 192], sizes = [8, 64], strides = [1, 1]} : vector<8x256xf32> to vector<8x64xf32>
    %78 = arith.mulf %75, %61 : vector<8x64xf32>
    %79 = arith.mulf %74, %76 : vector<8x64xf32>
    %80 = arith.addf %78, %79 : vector<8x64xf32>
    %81 = math.tanh %80 : vector<8x64xf32>
    %82 = arith.mulf %77, %81 : vector<8x64xf32>
    %83 = vector.extract_strided_slice %15 {offsets = [24, 0], sizes = [8, 256], strides = [1, 1]} : vector<64x256xf32> to vector<8x256xf32>
    %84 = arith.truncf %82 : vector<8x64xf32> to vector<8x64xbf16>
    %cst_19 = arith.constant dense<0.000000e+00> : vector<8x256xf32>
    %85 = tpu.matmul %84, %23, %cst_19 {dimension_numbers = #tpu.dot_dimension_numbers<[1], [0], [0], [1], [0, 0, 1, 1], [], []>} : vector<8x64xbf16>, vector<64x256xbf16>, vector<8x256xf32> -> vector<8x256xf32>
    %86 = arith.addf %83, %85 : vector<8x256xf32>
    %87 = arith.negf %86 : vector<8x256xf32>
    %88 = math.exp %87 : vector<8x256xf32>
    %cst_20 = arith.constant 1.000000e+00 : f32
    %89 = vector.broadcast %cst_20 : f32 to vector<8x256xf32>
    %90 = arith.addf %89, %88 : vector<8x256xf32>
    %91 = arith.divf %89, %90 : vector<8x256xf32>
    %92 = math.tanh %86 : vector<8x256xf32>
    %93 = vector.extract_strided_slice %91 {offsets = [0, 0], sizes = [8, 64], strides = [1, 1]} : vector<8x256xf32> to vector<8x64xf32>
    %94 = vector.extract_strided_slice %91 {offsets = [0, 64], sizes = [8, 64], strides = [1, 1]} : vector<8x256xf32> to vector<8x64xf32>
    %95 = vector.extract_strided_slice %92 {offsets = [0, 128], sizes = [8, 64], strides = [1, 1]} : vector<8x256xf32> to vector<8x64xf32>
    %96 = vector.extract_strided_slice %91 {offsets = [0, 192], sizes = [8, 64], strides = [1, 1]} : vector<8x256xf32> to vector<8x64xf32>
    %97 = arith.mulf %94, %80 : vector<8x64xf32>
    %98 = arith.mulf %93, %95 : vector<8x64xf32>
    %99 = arith.addf %97, %98 : vector<8x64xf32>
    %100 = math.tanh %99 : vector<8x64xf32>
    %101 = arith.mulf %96, %100 : vector<8x64xf32>
    %102 = vector.extract_strided_slice %15 {offsets = [32, 0], sizes = [8, 256], strides = [1, 1]} : vector<64x256xf32> to vector<8x256xf32>
    %103 = arith.truncf %101 : vector<8x64xf32> to vector<8x64xbf16>
    %cst_21 = arith.constant dense<0.000000e+00> : vector<8x256xf32>
    %104 = tpu.matmul %103, %23, %cst_21 {dimension_numbers = #tpu.dot_dimension_numbers<[1], [0], [0], [1], [0, 0, 1, 1], [], []>} : vector<8x64xbf16>, vector<64x256xbf16>, vector<8x256xf32> -> vector<8x256xf32>
    %105 = arith.addf %102, %104 : vector<8x256xf32>
    %106 = arith.negf %105 : vector<8x256xf32>
    %107 = math.exp %106 : vector<8x256xf32>
    %cst_22 = arith.constant 1.000000e+00 : f32
    %108 = vector.broadcast %cst_22 : f32 to vector<8x256xf32>
    %109 = arith.addf %108, %107 : vector<8x256xf32>
    %110 = arith.divf %108, %109 : vector<8x256xf32>
    %111 = math.tanh %105 : vector<8x256xf32>
    %112 = vector.extract_strided_slice %110 {offsets = [0, 0], sizes = [8, 64], strides = [1, 1]} : vector<8x256xf32> to vector<8x64xf32>
    %113 = vector.extract_strided_slice %110 {offsets = [0, 64], sizes = [8, 64], strides = [1, 1]} : vector<8x256xf32> to vector<8x64xf32>
    %114 = vector.extract_strided_slice %111 {offsets = [0, 128], sizes = [8, 64], strides = [1, 1]} : vector<8x256xf32> to vector<8x64xf32>
    %115 = vector.extract_strided_slice %110 {offsets = [0, 192], sizes = [8, 64], strides = [1, 1]} : vector<8x256xf32> to vector<8x64xf32>
    %116 = arith.mulf %113, %99 : vector<8x64xf32>
    %117 = arith.mulf %112, %114 : vector<8x64xf32>
    %118 = arith.addf %116, %117 : vector<8x64xf32>
    %119 = math.tanh %118 : vector<8x64xf32>
    %120 = arith.mulf %115, %119 : vector<8x64xf32>
    %121 = vector.extract_strided_slice %15 {offsets = [40, 0], sizes = [8, 256], strides = [1, 1]} : vector<64x256xf32> to vector<8x256xf32>
    %122 = arith.truncf %120 : vector<8x64xf32> to vector<8x64xbf16>
    %cst_23 = arith.constant dense<0.000000e+00> : vector<8x256xf32>
    %123 = tpu.matmul %122, %23, %cst_23 {dimension_numbers = #tpu.dot_dimension_numbers<[1], [0], [0], [1], [0, 0, 1, 1], [], []>} : vector<8x64xbf16>, vector<64x256xbf16>, vector<8x256xf32> -> vector<8x256xf32>
    %124 = arith.addf %121, %123 : vector<8x256xf32>
    %125 = arith.negf %124 : vector<8x256xf32>
    %126 = math.exp %125 : vector<8x256xf32>
    %cst_24 = arith.constant 1.000000e+00 : f32
    %127 = vector.broadcast %cst_24 : f32 to vector<8x256xf32>
    %128 = arith.addf %127, %126 : vector<8x256xf32>
    %129 = arith.divf %127, %128 : vector<8x256xf32>
    %130 = math.tanh %124 : vector<8x256xf32>
    %131 = vector.extract_strided_slice %129 {offsets = [0, 0], sizes = [8, 64], strides = [1, 1]} : vector<8x256xf32> to vector<8x64xf32>
    %132 = vector.extract_strided_slice %129 {offsets = [0, 64], sizes = [8, 64], strides = [1, 1]} : vector<8x256xf32> to vector<8x64xf32>
    %133 = vector.extract_strided_slice %130 {offsets = [0, 128], sizes = [8, 64], strides = [1, 1]} : vector<8x256xf32> to vector<8x64xf32>
    %134 = vector.extract_strided_slice %129 {offsets = [0, 192], sizes = [8, 64], strides = [1, 1]} : vector<8x256xf32> to vector<8x64xf32>
    %135 = arith.mulf %132, %118 : vector<8x64xf32>
    %136 = arith.mulf %131, %133 : vector<8x64xf32>
    %137 = arith.addf %135, %136 : vector<8x64xf32>
    %138 = math.tanh %137 : vector<8x64xf32>
    %139 = arith.mulf %134, %138 : vector<8x64xf32>
    %140 = vector.extract_strided_slice %15 {offsets = [48, 0], sizes = [8, 256], strides = [1, 1]} : vector<64x256xf32> to vector<8x256xf32>
    %141 = arith.truncf %139 : vector<8x64xf32> to vector<8x64xbf16>
    %cst_25 = arith.constant dense<0.000000e+00> : vector<8x256xf32>
    %142 = tpu.matmul %141, %23, %cst_25 {dimension_numbers = #tpu.dot_dimension_numbers<[1], [0], [0], [1], [0, 0, 1, 1], [], []>} : vector<8x64xbf16>, vector<64x256xbf16>, vector<8x256xf32> -> vector<8x256xf32>
    %143 = arith.addf %140, %142 : vector<8x256xf32>
    %144 = arith.negf %143 : vector<8x256xf32>
    %145 = math.exp %144 : vector<8x256xf32>
    %cst_26 = arith.constant 1.000000e+00 : f32
    %146 = vector.broadcast %cst_26 : f32 to vector<8x256xf32>
    %147 = arith.addf %146, %145 : vector<8x256xf32>
    %148 = arith.divf %146, %147 : vector<8x256xf32>
    %149 = math.tanh %143 : vector<8x256xf32>
    %150 = vector.extract_strided_slice %148 {offsets = [0, 0], sizes = [8, 64], strides = [1, 1]} : vector<8x256xf32> to vector<8x64xf32>
    %151 = vector.extract_strided_slice %148 {offsets = [0, 64], sizes = [8, 64], strides = [1, 1]} : vector<8x256xf32> to vector<8x64xf32>
    %152 = vector.extract_strided_slice %149 {offsets = [0, 128], sizes = [8, 64], strides = [1, 1]} : vector<8x256xf32> to vector<8x64xf32>
    %153 = vector.extract_strided_slice %148 {offsets = [0, 192], sizes = [8, 64], strides = [1, 1]} : vector<8x256xf32> to vector<8x64xf32>
    %154 = arith.mulf %151, %137 : vector<8x64xf32>
    %155 = arith.mulf %150, %152 : vector<8x64xf32>
    %156 = arith.addf %154, %155 : vector<8x64xf32>
    %157 = math.tanh %156 : vector<8x64xf32>
    %158 = arith.mulf %153, %157 : vector<8x64xf32>
    %159 = vector.extract_strided_slice %15 {offsets = [56, 0], sizes = [8, 256], strides = [1, 1]} : vector<64x256xf32> to vector<8x256xf32>
    %160 = arith.truncf %158 : vector<8x64xf32> to vector<8x64xbf16>
    %cst_27 = arith.constant dense<0.000000e+00> : vector<8x256xf32>
    %161 = tpu.matmul %160, %23, %cst_27 {dimension_numbers = #tpu.dot_dimension_numbers<[1], [0], [0], [1], [0, 0, 1, 1], [], []>} : vector<8x64xbf16>, vector<64x256xbf16>, vector<8x256xf32> -> vector<8x256xf32>
    %162 = arith.addf %159, %161 : vector<8x256xf32>
    %163 = arith.negf %162 : vector<8x256xf32>
    %164 = math.exp %163 : vector<8x256xf32>
    %cst_28 = arith.constant 1.000000e+00 : f32
    %165 = vector.broadcast %cst_28 : f32 to vector<8x256xf32>
    %166 = arith.addf %165, %164 : vector<8x256xf32>
    %167 = arith.divf %165, %166 : vector<8x256xf32>
    %168 = math.tanh %162 : vector<8x256xf32>
    %169 = vector.extract_strided_slice %167 {offsets = [0, 0], sizes = [8, 64], strides = [1, 1]} : vector<8x256xf32> to vector<8x64xf32>
    %170 = vector.extract_strided_slice %167 {offsets = [0, 64], sizes = [8, 64], strides = [1, 1]} : vector<8x256xf32> to vector<8x64xf32>
    %171 = vector.extract_strided_slice %168 {offsets = [0, 128], sizes = [8, 64], strides = [1, 1]} : vector<8x256xf32> to vector<8x64xf32>
    %172 = vector.extract_strided_slice %167 {offsets = [0, 192], sizes = [8, 64], strides = [1, 1]} : vector<8x256xf32> to vector<8x64xf32>
    %173 = arith.mulf %170, %156 : vector<8x64xf32>
    %174 = arith.mulf %169, %171 : vector<8x64xf32>
    %175 = arith.addf %173, %174 : vector<8x64xf32>
    %176 = math.tanh %175 : vector<8x64xf32>
    %177 = arith.mulf %172, %176 : vector<8x64xf32>
    %178 = arith.truncf %177 : vector<8x64xf32> to vector<8x64xbf16>
    %c0_29 = arith.constant 0 : index
    %c0_30 = arith.constant 0 : index
    %179 = vector.load %arg7[%c0_29, %c0_30] : memref<64x128xbf16, #tpu.memory_space<vmem>>, vector<64x128xbf16>
    %cst_31 = arith.constant dense<0.000000e+00> : vector<8x128xf32>
    %180 = tpu.matmul %178, %179, %cst_31 {dimension_numbers = #tpu.dot_dimension_numbers<[1], [0], [0], [1], [0, 0, 1, 1], [], []>} : vector<8x64xbf16>, vector<64x128xbf16>, vector<8x128xf32> -> vector<8x128xf32>
    %c0_32 = arith.constant 0 : index
    %c0_33 = arith.constant 0 : index
    %181 = vector.load %arg8[%c0_32, %c0_33] : memref<1x128xf32, #tpu.memory_space<vmem>>, vector<1x128xf32>
    %182 = vector.broadcast %181 : vector<1x128xf32> to vector<8x128xf32>
    %183 = arith.addf %180, %182 : vector<8x128xf32>
    %c0_34 = arith.constant 0 : index
    %c0_35 = arith.constant 0 : index
    %184 = vector.load %arg9[%c0_34, %c0_35] : memref<64x128xbf16, #tpu.memory_space<vmem>>, vector<64x128xbf16>
    %cst_36 = arith.constant dense<0.000000e+00> : vector<8x128xf32>
    %185 = tpu.matmul %178, %184, %cst_36 {dimension_numbers = #tpu.dot_dimension_numbers<[1], [0], [0], [1], [0, 0, 1, 1], [], []>} : vector<8x64xbf16>, vector<64x128xbf16>, vector<8x128xf32> -> vector<8x128xf32>
    %c0_37 = arith.constant 0 : index
    %c0_38 = arith.constant 0 : index
    %186 = vector.load %arg10[%c0_37, %c0_38] : memref<1x128xf32, #tpu.memory_space<vmem>>, vector<1x128xf32>
    %187 = vector.broadcast %186 : vector<1x128xf32> to vector<8x128xf32>
    %188 = arith.addf %185, %187 : vector<8x128xf32>
    %c0_39 = arith.constant 0 : index
    %c0_40 = arith.constant 0 : index
    %189 = vector.load %arg20[%c0_39, %c0_40] : memref<8x128xf32, #tpu.memory_space<vmem>>, vector<8x128xf32>
    tpu.vector_store %arg20[%c0_39, %c0_40], %183 {strides = array<i32>} : memref<8x128xf32, #tpu.memory_space<vmem>>, vector<8x128xf32>,
    %c0_41 = arith.constant 0 : index
    %c0_42 = arith.constant 0 : index
    %190 = vector.load %arg21[%c0_41, %c0_42] : memref<8x128xf32, #tpu.memory_space<vmem>>, vector<8x128xf32>
    tpu.vector_store %arg21[%c0_41, %c0_42], %188 {strides = array<i32>} : memref<8x128xf32, #tpu.memory_space<vmem>>, vector<8x128xf32>,
    %c0_43 = arith.constant 0 : index
    %c0_44 = arith.constant 0 : index
    %191 = vector.load %arg3[%c0_43, %c0_44] : memref<8x128xf32, #tpu.memory_space<vmem>>, vector<8x128xf32>
    %cst_45 = arith.constant 5.000000e-01 : f32
    %192 = vector.broadcast %cst_45 : f32 to vector<8x128xf32>
    %193 = arith.mulf %192, %188 : vector<8x128xf32>
    %194 = math.exp %193 : vector<8x128xf32>
    %195 = arith.mulf %191, %194 : vector<8x128xf32>
    %196 = arith.addf %183, %195 : vector<8x128xf32>
    %197 = arith.truncf %196 : vector<8x128xf32> to vector<8x128xbf16>
    %c0_46 = arith.constant 0 : index
    %c0_47 = arith.constant 0 : index
    %198 = vector.load %arg11[%c0_46, %c0_47] : memref<128x32xbf16, #tpu.memory_space<vmem>>, vector<128x32xbf16>
    %cst_48 = arith.constant dense<0.000000e+00> : vector<8x32xf32>
    %199 = tpu.matmul %197, %198, %cst_48 {dimension_numbers = #tpu.dot_dimension_numbers<[1], [0], [0], [1], [0, 0, 1, 1], [], []>} : vector<8x128xbf16>, vector<128x32xbf16>, vector<8x32xf32> -> vector<8x32xf32>
    %c0_49 = arith.constant 0 : index
    %c0_50 = arith.constant 0 : index
    %200 = vector.load %arg12[%c0_49, %c0_50] : memref<1x32xf32, #tpu.memory_space<vmem>>, vector<1x32xf32>
    %201 = vector.broadcast %200 : vector<1x32xf32> to vector<8x32xf32>
    %202 = arith.addf %199, %201 : vector<8x32xf32>
    %cst_51 = arith.constant 0.000000e+00 : f32
    %203 = vector.broadcast %cst_51 : f32 to vector<8x32xf32>
    %c0_52 = arith.constant 0 : index
    %c0_53 = arith.constant 0 : index
    %204 = vector.load %arg14[%c0_52, %c0_53] : memref<128x128xbf16, #tpu.memory_space<vmem>>, vector<128x128xbf16>
    %cst_54 = arith.constant dense<0.000000e+00> : vector<8x128xf32>
    %205 = tpu.matmul %197, %204, %cst_54 {dimension_numbers = #tpu.dot_dimension_numbers<[1], [0], [0], [1], [0, 0, 1, 1], [], []>} : vector<8x128xbf16>, vector<128x128xbf16>, vector<8x128xf32> -> vector<8x128xf32>
    %c0_55 = arith.constant 0 : index
    %c0_56 = arith.constant 0 : index
    %206 = vector.load %arg15[%c0_55, %c0_56] : memref<1x128xf32, #tpu.memory_space<vmem>>, vector<1x128xf32>
    %207 = vector.broadcast %206 : vector<1x128xf32> to vector<8x128xf32>
    %208 = arith.addf %205, %207 : vector<8x128xf32>
    %c0_57 = arith.constant 0 : index
    %c0_58 = arith.constant 0 : index
    %209 = vector.load %arg13[%c0_57, %c0_58] : memref<32x128xbf16, #tpu.memory_space<vmem>>, vector<32x128xbf16>
    %cst_59 = arith.constant dense<0.000000e+00> : vector<64x128xf32>
    %210 = tpu.matmul %22, %209, %cst_59 {dimension_numbers = #tpu.dot_dimension_numbers<[1], [0], [0], [1], [0, 0, 1, 1], [], []>} : vector<64x32xbf16>, vector<32x128xbf16>, vector<64x128xf32> -> vector<64x128xf32>
    %211 = tpu.concatenate %208, %208, %208, %208, %208, %208, %208, %208 in 0 : vector<8x128xf32>, vector<8x128xf32>, vector<8x128xf32>, vector<8x128xf32>, vector<8x128xf32>, vector<8x128xf32>, vector<8x128xf32>, vector<8x128xf32> -> vector<64x128xf32>
    %212 = arith.addf %210, %211 : vector<64x128xf32>
    %c0_60 = arith.constant 0 : index
    %c0_61 = arith.constant 0 : index
    %213 = vector.load %arg16[%c0_60, %c0_61] : memref<32x128xbf16, #tpu.memory_space<vmem>>, vector<32x128xbf16>
    %214 = vector.extract_strided_slice %212 {offsets = [0, 0], sizes = [8, 128], strides = [1, 1]} : vector<64x128xf32> to vector<8x128xf32>
    %215 = arith.truncf %202 : vector<8x32xf32> to vector<8x32xbf16>
    %cst_62 = arith.constant dense<0.000000e+00> : vector<8x128xf32>
    %216 = tpu.matmul %215, %213, %cst_62 {dimension_numbers = #tpu.dot_dimension_numbers<[1], [0], [0], [1], [0, 0, 1, 1], [], []>} : vector<8x32xbf16>, vector<32x128xbf16>, vector<8x128xf32> -> vector<8x128xf32>
    %217 = arith.addf %214, %216 : vector<8x128xf32>
    %218 = arith.negf %217 : vector<8x128xf32>
    %219 = math.exp %218 : vector<8x128xf32>
    %cst_63 = arith.constant 1.000000e+00 : f32
    %220 = vector.broadcast %cst_63 : f32 to vector<8x128xf32>
    %221 = arith.addf %220, %219 : vector<8x128xf32>
    %222 = arith.divf %220, %221 : vector<8x128xf32>
    %223 = math.tanh %217 : vector<8x128xf32>
    %224 = vector.extract_strided_slice %222 {offsets = [0, 0], sizes = [8, 32], strides = [1, 1]} : vector<8x128xf32> to vector<8x32xf32>
    %225 = vector.extract_strided_slice %222 {offsets = [0, 32], sizes = [8, 32], strides = [1, 1]} : vector<8x128xf32> to vector<8x32xf32>
    %226 = vector.extract_strided_slice %223 {offsets = [0, 64], sizes = [8, 32], strides = [1, 1]} : vector<8x128xf32> to vector<8x32xf32>
    %227 = vector.extract_strided_slice %222 {offsets = [0, 96], sizes = [8, 32], strides = [1, 1]} : vector<8x128xf32> to vector<8x32xf32>
    %228 = arith.mulf %225, %203 : vector<8x32xf32>
    %229 = arith.mulf %224, %226 : vector<8x32xf32>
    %230 = arith.addf %228, %229 : vector<8x32xf32>
    %231 = math.tanh %230 : vector<8x32xf32>
    %232 = arith.mulf %227, %231 : vector<8x32xf32>
    %c0_64 = arith.constant 0 : index
    %c0_65 = arith.constant 0 : index
    %233 = vector.load %arg22[%c0_64, %c0_65] : memref<64x32xf32, #tpu.memory_space<vmem>>, vector<8x32xf32>
    tpu.vector_store %arg22[%c0_64, %c0_65], %232 {strides = array<i32>} : memref<64x32xf32, #tpu.memory_space<vmem>>, vector<8x32xf32>,
    %234 = vector.extract_strided_slice %212 {offsets = [8, 0], sizes = [8, 128], strides = [1, 1]} : vector<64x128xf32> to vector<8x128xf32>
    %235 = arith.truncf %232 : vector<8x32xf32> to vector<8x32xbf16>
    %cst_66 = arith.constant dense<0.000000e+00> : vector<8x128xf32>
    %236 = tpu.matmul %235, %213, %cst_66 {dimension_numbers = #tpu.dot_dimension_numbers<[1], [0], [0], [1], [0, 0, 1, 1], [], []>} : vector<8x32xbf16>, vector<32x128xbf16>, vector<8x128xf32> -> vector<8x128xf32>
    %237 = arith.addf %234, %236 : vector<8x128xf32>
    %238 = arith.negf %237 : vector<8x128xf32>
    %239 = math.exp %238 : vector<8x128xf32>
    %cst_67 = arith.constant 1.000000e+00 : f32
    %240 = vector.broadcast %cst_67 : f32 to vector<8x128xf32>
    %241 = arith.addf %240, %239 : vector<8x128xf32>
    %242 = arith.divf %240, %241 : vector<8x128xf32>
    %243 = math.tanh %237 : vector<8x128xf32>
    %244 = vector.extract_strided_slice %242 {offsets = [0, 0], sizes = [8, 32], strides = [1, 1]} : vector<8x128xf32> to vector<8x32xf32>
    %245 = vector.extract_strided_slice %242 {offsets = [0, 32], sizes = [8, 32], strides = [1, 1]} : vector<8x128xf32> to vector<8x32xf32>
    %246 = vector.extract_strided_slice %243 {offsets = [0, 64], sizes = [8, 32], strides = [1, 1]} : vector<8x128xf32> to vector<8x32xf32>
    %247 = vector.extract_strided_slice %242 {offsets = [0, 96], sizes = [8, 32], strides = [1, 1]} : vector<8x128xf32> to vector<8x32xf32>
    %248 = arith.mulf %245, %230 : vector<8x32xf32>
    %249 = arith.mulf %244, %246 : vector<8x32xf32>
    %250 = arith.addf %248, %249 : vector<8x32xf32>
    %251 = math.tanh %250 : vector<8x32xf32>
    %252 = arith.mulf %247, %251 : vector<8x32xf32>
    %c8 = arith.constant 8 : index
    %c0_68 = arith.constant 0 : index
    %253 = vector.load %arg22[%c8, %c0_68] : memref<64x32xf32, #tpu.memory_space<vmem>>, vector<8x32xf32>
    tpu.vector_store %arg22[%c8, %c0_68], %252 {strides = array<i32>} : memref<64x32xf32, #tpu.memory_space<vmem>>, vector<8x32xf32>,
    %254 = vector.extract_strided_slice %212 {offsets = [16, 0], sizes = [8, 128], strides = [1, 1]} : vector<64x128xf32> to vector<8x128xf32>
    %255 = arith.truncf %252 : vector<8x32xf32> to vector<8x32xbf16>
    %cst_69 = arith.constant dense<0.000000e+00> : vector<8x128xf32>
    %256 = tpu.matmul %255, %213, %cst_69 {dimension_numbers = #tpu.dot_dimension_numbers<[1], [0], [0], [1], [0, 0, 1, 1], [], []>} : vector<8x32xbf16>, vector<32x128xbf16>, vector<8x128xf32> -> vector<8x128xf32>
    %257 = arith.addf %254, %256 : vector<8x128xf32>
    %258 = arith.negf %257 : vector<8x128xf32>
    %259 = math.exp %258 : vector<8x128xf32>
    %cst_70 = arith.constant 1.000000e+00 : f32
    %260 = vector.broadcast %cst_70 : f32 to vector<8x128xf32>
    %261 = arith.addf %260, %259 : vector<8x128xf32>
    %262 = arith.divf %260, %261 : vector<8x128xf32>
    %263 = math.tanh %257 : vector<8x128xf32>
    %264 = vector.extract_strided_slice %262 {offsets = [0, 0], sizes = [8, 32], strides = [1, 1]} : vector<8x128xf32> to vector<8x32xf32>
    %265 = vector.extract_strided_slice %262 {offsets = [0, 32], sizes = [8, 32], strides = [1, 1]} : vector<8x128xf32> to vector<8x32xf32>
    %266 = vector.extract_strided_slice %263 {offsets = [0, 64], sizes = [8, 32], strides = [1, 1]} : vector<8x128xf32> to vector<8x32xf32>
    %267 = vector.extract_strided_slice %262 {offsets = [0, 96], sizes = [8, 32], strides = [1, 1]} : vector<8x128xf32> to vector<8x32xf32>
    %268 = arith.mulf %265, %250 : vector<8x32xf32>
    %269 = arith.mulf %264, %266 : vector<8x32xf32>
    %270 = arith.addf %268, %269 : vector<8x32xf32>
    %271 = math.tanh %270 : vector<8x32xf32>
    %272 = arith.mulf %267, %271 : vector<8x32xf32>
    %c16 = arith.constant 16 : index
    %c0_71 = arith.constant 0 : index
    %273 = vector.load %arg22[%c16, %c0_71] : memref<64x32xf32, #tpu.memory_space<vmem>>, vector<8x32xf32>
    tpu.vector_store %arg22[%c16, %c0_71], %272 {strides = array<i32>} : memref<64x32xf32, #tpu.memory_space<vmem>>, vector<8x32xf32>,
    %274 = vector.extract_strided_slice %212 {offsets = [24, 0], sizes = [8, 128], strides = [1, 1]} : vector<64x128xf32> to vector<8x128xf32>
    %275 = arith.truncf %272 : vector<8x32xf32> to vector<8x32xbf16>
    %cst_72 = arith.constant dense<0.000000e+00> : vector<8x128xf32>
    %276 = tpu.matmul %275, %213, %cst_72 {dimension_numbers = #tpu.dot_dimension_numbers<[1], [0], [0], [1], [0, 0, 1, 1], [], []>} : vector<8x32xbf16>, vector<32x128xbf16>, vector<8x128xf32> -> vector<8x128xf32>
    %277 = arith.addf %274, %276 : vector<8x128xf32>
    %278 = arith.negf %277 : vector<8x128xf32>
    %279 = math.exp %278 : vector<8x128xf32>
    %cst_73 = arith.constant 1.000000e+00 : f32
    %280 = vector.broadcast %cst_73 : f32 to vector<8x128xf32>
    %281 = arith.addf %280, %279 : vector<8x128xf32>
    %282 = arith.divf %280, %281 : vector<8x128xf32>
    %283 = math.tanh %277 : vector<8x128xf32>
    %284 = vector.extract_strided_slice %282 {offsets = [0, 0], sizes = [8, 32], strides = [1, 1]} : vector<8x128xf32> to vector<8x32xf32>
    %285 = vector.extract_strided_slice %282 {offsets = [0, 32], sizes = [8, 32], strides = [1, 1]} : vector<8x128xf32> to vector<8x32xf32>
    %286 = vector.extract_strided_slice %283 {offsets = [0, 64], sizes = [8, 32], strides = [1, 1]} : vector<8x128xf32> to vector<8x32xf32>
    %287 = vector.extract_strided_slice %282 {offsets = [0, 96], sizes = [8, 32], strides = [1, 1]} : vector<8x128xf32> to vector<8x32xf32>
    %288 = arith.mulf %285, %270 : vector<8x32xf32>
    %289 = arith.mulf %284, %286 : vector<8x32xf32>
    %290 = arith.addf %288, %289 : vector<8x32xf32>
    %291 = math.tanh %290 : vector<8x32xf32>
    %292 = arith.mulf %287, %291 : vector<8x32xf32>
    %c24 = arith.constant 24 : index
    %c0_74 = arith.constant 0 : index
    %293 = vector.load %arg22[%c24, %c0_74] : memref<64x32xf32, #tpu.memory_space<vmem>>, vector<8x32xf32>
    tpu.vector_store %arg22[%c24, %c0_74], %292 {strides = array<i32>} : memref<64x32xf32, #tpu.memory_space<vmem>>, vector<8x32xf32>,
    %294 = vector.extract_strided_slice %212 {offsets = [32, 0], sizes = [8, 128], strides = [1, 1]} : vector<64x128xf32> to vector<8x128xf32>
    %295 = arith.truncf %292 : vector<8x32xf32> to vector<8x32xbf16>
    %cst_75 = arith.constant dense<0.000000e+00> : vector<8x128xf32>
    %296 = tpu.matmul %295, %213, %cst_75 {dimension_numbers = #tpu.dot_dimension_numbers<[1], [0], [0], [1], [0, 0, 1, 1], [], []>} : vector<8x32xbf16>, vector<32x128xbf16>, vector<8x128xf32> -> vector<8x128xf32>
    %297 = arith.addf %294, %296 : vector<8x128xf32>
    %298 = arith.negf %297 : vector<8x128xf32>
    %299 = math.exp %298 : vector<8x128xf32>
    %cst_76 = arith.constant 1.000000e+00 : f32
    %300 = vector.broadcast %cst_76 : f32 to vector<8x128xf32>
    %301 = arith.addf %300, %299 : vector<8x128xf32>
    %302 = arith.divf %300, %301 : vector<8x128xf32>
    %303 = math.tanh %297 : vector<8x128xf32>
    %304 = vector.extract_strided_slice %302 {offsets = [0, 0], sizes = [8, 32], strides = [1, 1]} : vector<8x128xf32> to vector<8x32xf32>
    %305 = vector.extract_strided_slice %302 {offsets = [0, 32], sizes = [8, 32], strides = [1, 1]} : vector<8x128xf32> to vector<8x32xf32>
    %306 = vector.extract_strided_slice %303 {offsets = [0, 64], sizes = [8, 32], strides = [1, 1]} : vector<8x128xf32> to vector<8x32xf32>
    %307 = vector.extract_strided_slice %302 {offsets = [0, 96], sizes = [8, 32], strides = [1, 1]} : vector<8x128xf32> to vector<8x32xf32>
    %308 = arith.mulf %305, %290 : vector<8x32xf32>
    %309 = arith.mulf %304, %306 : vector<8x32xf32>
    %310 = arith.addf %308, %309 : vector<8x32xf32>
    %311 = math.tanh %310 : vector<8x32xf32>
    %312 = arith.mulf %307, %311 : vector<8x32xf32>
    %c32 = arith.constant 32 : index
    %c0_77 = arith.constant 0 : index
    %313 = vector.load %arg22[%c32, %c0_77] : memref<64x32xf32, #tpu.memory_space<vmem>>, vector<8x32xf32>
    tpu.vector_store %arg22[%c32, %c0_77], %312 {strides = array<i32>} : memref<64x32xf32, #tpu.memory_space<vmem>>, vector<8x32xf32>,
    %314 = vector.extract_strided_slice %212 {offsets = [40, 0], sizes = [8, 128], strides = [1, 1]} : vector<64x128xf32> to vector<8x128xf32>
    %315 = arith.truncf %312 : vector<8x32xf32> to vector<8x32xbf16>
    %cst_78 = arith.constant dense<0.000000e+00> : vector<8x128xf32>
    %316 = tpu.matmul %315, %213, %cst_78 {dimension_numbers = #tpu.dot_dimension_numbers<[1], [0], [0], [1], [0, 0, 1, 1], [], []>} : vector<8x32xbf16>, vector<32x128xbf16>, vector<8x128xf32> -> vector<8x128xf32>
    %317 = arith.addf %314, %316 : vector<8x128xf32>
    %318 = arith.negf %317 : vector<8x128xf32>
    %319 = math.exp %318 : vector<8x128xf32>
    %cst_79 = arith.constant 1.000000e+00 : f32
    %320 = vector.broadcast %cst_79 : f32 to vector<8x128xf32>
    %321 = arith.addf %320, %319 : vector<8x128xf32>
    %322 = arith.divf %320, %321 : vector<8x128xf32>
    %323 = math.tanh %317 : vector<8x128xf32>
    %324 = vector.extract_strided_slice %322 {offsets = [0, 0], sizes = [8, 32], strides = [1, 1]} : vector<8x128xf32> to vector<8x32xf32>
    %325 = vector.extract_strided_slice %322 {offsets = [0, 32], sizes = [8, 32], strides = [1, 1]} : vector<8x128xf32> to vector<8x32xf32>
    %326 = vector.extract_strided_slice %323 {offsets = [0, 64], sizes = [8, 32], strides = [1, 1]} : vector<8x128xf32> to vector<8x32xf32>
    %327 = vector.extract_strided_slice %322 {offsets = [0, 96], sizes = [8, 32], strides = [1, 1]} : vector<8x128xf32> to vector<8x32xf32>
    %328 = arith.mulf %325, %310 : vector<8x32xf32>
    %329 = arith.mulf %324, %326 : vector<8x32xf32>
    %330 = arith.addf %328, %329 : vector<8x32xf32>
    %331 = math.tanh %330 : vector<8x32xf32>
    %332 = arith.mulf %327, %331 : vector<8x32xf32>
    %c40 = arith.constant 40 : index
    %c0_80 = arith.constant 0 : index
    %333 = vector.load %arg22[%c40, %c0_80] : memref<64x32xf32, #tpu.memory_space<vmem>>, vector<8x32xf32>
    tpu.vector_store %arg22[%c40, %c0_80], %332 {strides = array<i32>} : memref<64x32xf32, #tpu.memory_space<vmem>>, vector<8x32xf32>,
    %334 = vector.extract_strided_slice %212 {offsets = [48, 0], sizes = [8, 128], strides = [1, 1]} : vector<64x128xf32> to vector<8x128xf32>
    %335 = arith.truncf %332 : vector<8x32xf32> to vector<8x32xbf16>
    %cst_81 = arith.constant dense<0.000000e+00> : vector<8x128xf32>
    %336 = tpu.matmul %335, %213, %cst_81 {dimension_numbers = #tpu.dot_dimension_numbers<[1], [0], [0], [1], [0, 0, 1, 1], [], []>} : vector<8x32xbf16>, vector<32x128xbf16>, vector<8x128xf32> -> vector<8x128xf32>
    %337 = arith.addf %334, %336 : vector<8x128xf32>
    %338 = arith.negf %337 : vector<8x128xf32>
    %339 = math.exp %338 : vector<8x128xf32>
    %cst_82 = arith.constant 1.000000e+00 : f32
    %340 = vector.broadcast %cst_82 : f32 to vector<8x128xf32>
    %341 = arith.addf %340, %339 : vector<8x128xf32>
    %342 = arith.divf %340, %341 : vector<8x128xf32>
    %343 = math.tanh %337 : vector<8x128xf32>
    %344 = vector.extract_strided_slice %342 {offsets = [0, 0], sizes = [8, 32], strides = [1, 1]} : vector<8x128xf32> to vector<8x32xf32>
    %345 = vector.extract_strided_slice %342 {offsets = [0, 32], sizes = [8, 32], strides = [1, 1]} : vector<8x128xf32> to vector<8x32xf32>
    %346 = vector.extract_strided_slice %343 {offsets = [0, 64], sizes = [8, 32], strides = [1, 1]} : vector<8x128xf32> to vector<8x32xf32>
    %347 = vector.extract_strided_slice %342 {offsets = [0, 96], sizes = [8, 32], strides = [1, 1]} : vector<8x128xf32> to vector<8x32xf32>
    %348 = arith.mulf %345, %330 : vector<8x32xf32>
    %349 = arith.mulf %344, %346 : vector<8x32xf32>
    %350 = arith.addf %348, %349 : vector<8x32xf32>
    %351 = math.tanh %350 : vector<8x32xf32>
    %352 = arith.mulf %347, %351 : vector<8x32xf32>
    %c48 = arith.constant 48 : index
    %c0_83 = arith.constant 0 : index
    %353 = vector.load %arg22[%c48, %c0_83] : memref<64x32xf32, #tpu.memory_space<vmem>>, vector<8x32xf32>
    tpu.vector_store %arg22[%c48, %c0_83], %352 {strides = array<i32>} : memref<64x32xf32, #tpu.memory_space<vmem>>, vector<8x32xf32>,
    %354 = vector.extract_strided_slice %212 {offsets = [56, 0], sizes = [8, 128], strides = [1, 1]} : vector<64x128xf32> to vector<8x128xf32>
    %355 = arith.truncf %352 : vector<8x32xf32> to vector<8x32xbf16>
    %cst_84 = arith.constant dense<0.000000e+00> : vector<8x128xf32>
    %356 = tpu.matmul %355, %213, %cst_84 {dimension_numbers = #tpu.dot_dimension_numbers<[1], [0], [0], [1], [0, 0, 1, 1], [], []>} : vector<8x32xbf16>, vector<32x128xbf16>, vector<8x128xf32> -> vector<8x128xf32>
    %357 = arith.addf %354, %356 : vector<8x128xf32>
    %358 = arith.negf %357 : vector<8x128xf32>
    %359 = math.exp %358 : vector<8x128xf32>
    %cst_85 = arith.constant 1.000000e+00 : f32
    %360 = vector.broadcast %cst_85 : f32 to vector<8x128xf32>
    %361 = arith.addf %360, %359 : vector<8x128xf32>
    %362 = arith.divf %360, %361 : vector<8x128xf32>
    %363 = math.tanh %357 : vector<8x128xf32>
    %364 = vector.extract_strided_slice %362 {offsets = [0, 0], sizes = [8, 32], strides = [1, 1]} : vector<8x128xf32> to vector<8x32xf32>
    %365 = vector.extract_strided_slice %362 {offsets = [0, 32], sizes = [8, 32], strides = [1, 1]} : vector<8x128xf32> to vector<8x32xf32>
    %366 = vector.extract_strided_slice %363 {offsets = [0, 64], sizes = [8, 32], strides = [1, 1]} : vector<8x128xf32> to vector<8x32xf32>
    %367 = vector.extract_strided_slice %362 {offsets = [0, 96], sizes = [8, 32], strides = [1, 1]} : vector<8x128xf32> to vector<8x32xf32>
    %368 = arith.mulf %365, %350 : vector<8x32xf32>
    %369 = arith.mulf %364, %366 : vector<8x32xf32>
    %370 = arith.addf %368, %369 : vector<8x32xf32>
    %371 = math.tanh %370 : vector<8x32xf32>
    %372 = arith.mulf %367, %371 : vector<8x32xf32>
    %c56 = arith.constant 56 : index
    %c0_86 = arith.constant 0 : index
    %373 = vector.load %arg22[%c56, %c0_86] : memref<64x32xf32, #tpu.memory_space<vmem>>, vector<8x32xf32>
    tpu.vector_store %arg22[%c56, %c0_86], %372 {strides = array<i32>} : memref<64x32xf32, #tpu.memory_space<vmem>>, vector<8x32xf32>,
    %c0_87 = arith.constant 0 : index
    %c0_88 = arith.constant 0 : index
    %374 = vector.load %arg22[%c0_87, %c0_88] : memref<64x32xf32, #tpu.memory_space<vmem>>, vector<64x32xf32>
    %375 = arith.truncf %374 : vector<64x32xf32> to vector<64x32xbf16>
    %c0_89 = arith.constant 0 : index
    %c0_90 = arith.constant 0 : index
    %376 = vector.load %arg17[%c0_89, %c0_90] : memref<32x128xbf16, #tpu.memory_space<vmem>>, vector<32x128xbf16>
    %cst_91 = arith.constant dense<0.000000e+00> : vector<64x128xf32>
    %377 = tpu.matmul %375, %376, %cst_91 {dimension_numbers = #tpu.dot_dimension_numbers<[1], [0], [0], [1], [0, 0, 1, 1], [], []>} : vector<64x32xbf16>, vector<32x128xbf16>, vector<64x128xf32> -> vector<64x128xf32>
    %c0_92 = arith.constant 0 : index
    %c0_93 = arith.constant 0 : index
    %378 = vector.load %arg18[%c0_92, %c0_93] : memref<1x128xf32, #tpu.memory_space<vmem>>, vector<1x128xf32>
    %379 = vector.broadcast %378 : vector<1x128xf32> to vector<64x128xf32>
    %380 = arith.addf %377, %379 : vector<64x128xf32>
    %c0_94 = arith.constant 0 : index
    %c0_95 = arith.constant 0 : index
    %381 = vector.load %arg19[%c0_94, %c0_95] : memref<64x128xf32, #tpu.memory_space<vmem>>, vector<64x128xf32>
    tpu.vector_store %arg19[%c0_94, %c0_95], %380 {strides = array<i32>} : memref<64x128xf32, #tpu.memory_space<vmem>>, vector<64x128xf32>,
    return
  }
}

</mosaic_0001>

<bundles_post_ra>
// kernel: tpu_custom_call.1
= control target key start
LH: loop header
LB: loop body
LE: loop exit
PB: predicated region body
PF: predicated region fallthrough
CT: control target
= control target key end

     0   :  { %s3746_s0 = inlined_call_operand.vmem [shape: s32[64,1], index: 0, kind: input, shape index: {}]   ;;  %s3747_s1 = inlined_call_operand.vmem [shape: s32[64,1], index: 1, kind: input, shape index: {}]   ;;  %s3748_s2 = inlined_call_operand.vmem [shape: s32[64,1], index: 2, kind: input, shape index: {}]   ;;  %s3749_s3 = inlined_call_operand.hbm [shape: f32[8,128], index: 3, kind: input, shape index: {}]   ;;  %s3750_s4 = inlined_call_operand.vmem [shape: bf16[64,256], index: 4, kind: input, shape index: {}]   ;;  %s3751_s5 = inlined_call_operand.hbm [shape: f32[1,256], index: 5, kind: input, shape index: {}]   ;;  %s3752_s6 = inlined_call_operand.vmem [shape: bf16[64,256], index: 6, kind: input, shape index: {}]   ;;  %s3753_s7 = inlined_call_operand.vmem [shape: bf16[64,128], index: 7, kind: input, shape index: {}]   ;;  %s3754_s8 = inlined_call_operand.hbm [shape: f32[1,128], index: 8, kind: input, shape index: {}]   ;;  %s3755_s9 = inlined_call_operand.vmem [shape: bf16[64,128], index: 9, kind: input, shape index: {}]   ;;  %s3756_s10 = inlined_call_operand.hbm [shape: f32[1,128], index: 10, kind: input, shape index: {}]   ;;  %s3757_s11 = inlined_call_operand.vmem [shape: bf16[128,32], index: 11, kind: input, shape index: {}]   ;;  %s3758_s12 = inlined_call_operand.hbm [shape: f32[1,32], index: 12, kind: input, shape index: {}]   ;;  %s3759_s13 = inlined_call_operand.hbm [shape: bf16[32,128], index: 13, kind: input, shape index: {}]   ;;  %s3760_s14 = inlined_call_operand.vmem [shape: bf16[128,128], index: 14, kind: input, shape index: {}]   ;;  %s3761_s15 = inlined_call_operand.hbm [shape: f32[1,128], index: 15, kind: input, shape index: {}]   ;;  %s3762_s16 = inlined_call_operand.vmem [shape: bf16[32,128], index: 16, kind: input, shape index: {}]   ;;  %s3763_s17 = inlined_call_operand.hbm [shape: bf16[32,128], index: 17, kind: input, shape index: {}]   ;;  %s3764_s18 = inlined_call_operand.hbm [shape: f32[1,128], index: 18, kind: input, shape index: {}]   ;;  %s3765_s19 = inlined_call_operand.hbm [shape: f32[64,128], index: 19, kind: output, shape index: {0}]   ;;  %s3766_s20 = inlined_call_operand.hbm [shape: f32[8,128], index: 20, kind: output, shape index: {1}]   ;;  %s3767_s21 = inlined_call_operand.hbm [shape: f32[8,128], index: 21, kind: output, shape index: {2}]  }
   0x1   :  { %3772 = sst [smem:[#allocation29_spill]] %s3746_s0 }
   0x2   :  { %3773 = sst [smem:[#allocation30_spill]] %s3747_s1 }
   0x3   :  { %3774 = sst [smem:[#allocation31_spill]] %s3748_s2 }
   0x4   :  { %3775 = sst [smem:[#allocation32_spill]] %s3749_s3 }
   0x5   :  { %3776 = sst [smem:[#allocation33_spill]] %s3750_s4 }
   0x6   :  { %3777 = sst [smem:[#allocation34_spill]] %s3751_s5 }
   0x7   :  { %27 = vsyncpa [#allocation4], 0 }
   0x8   :  { %28 = vsyncpa [#allocation7], 0 }
   0x9   :  { %29 = vsyncpa [#allocation10], 0 }
   0xa   :  { %30 = vsyncpa [#allocation13], 0 }
   0xb   :  { %31 = vsyncpa [#allocation16], 0 }
   0xc   :  { %32 = vsyncpa [#allocation5], 0  ;;  %s3778_s26 = sld [smem:[#allocation34_spill]] }
  0x12   :  { %s58_s27 = sshll.u32 %s3778_s26, 4  ;;  %s59_s27 = int_to_ptr.hbm [resolvable:$true] %s58_s27 }
  0x13   :  { %33 = vsyncpa [#allocation20], 0  ;;  %s2984_s3 = smov [#allocation6]   ;;  %s86_s4 = sshll.u32 %s3756_s10, 4  ;;  %s87_s4 = int_to_ptr.hbm [resolvable:$true] %s86_s4 }
  0x14   :  { %s60_s28 = sshll.u32 %s2984_s3, 4  ;;  %s2985_s30 = smov [#allocation9]   ;;  %s61_s28 = int_to_ptr.vmem [resolvable:$true] %s60_s28 }
  0x15   :  { %63 = dma.hbm_to_vmem [thread:$0]  %s59_s27, 32, %s61_s28, [#allocation7]  }
  0x16   :  { %s88_s5 = sshll.u32 %s2985_s30, 4  ;;  %s109_s1 = sshll.u32 %s3759_s13, 4  ;;  %s89_s5 = int_to_ptr.vmem [resolvable:$true] %s88_s5  ;;  %s110_s1 = int_to_ptr.hbm [resolvable:$true] %s109_s1 }
  0x17   :  { %91 = dma.hbm_to_vmem [thread:$0]  %s87_s4, 16, %s89_s5, [#allocation10]  }
  0x18   :  { %s2986_s24 = smov [#allocation12]   ;;  %s137_s3 = sshll.u32 %s3763_s17, 4  ;;  %s138_s3 = int_to_ptr.hbm [resolvable:$true] %s137_s3 }
  0x19   :  { %s111_s2 = sshll.u32 %s2986_s24, 4  ;;  %s2987_s29 = smov 64   ;;  %s112_s2 = int_to_ptr.vmem [resolvable:$true] %s111_s2 }
  0x1a   :  { %s2988_s10 = smov 4   ;;  %s2989_s27 = smov [#allocation15]  }
  0x1b   :  { %117 = dma.hbm_to_vmem [thread:$0]  %s110_s1, 256, %s112_s2, [#allocation13], %s2987_s29, %s2987_s29, %s2988_s10  }
  0x1c   :  { %s139_s28 = sshll.u32 %s2989_s27, 4  ;;  %s3779_s30 = sld [smem:[#allocation32_spill]]  ;;  %s140_s28 = int_to_ptr.vmem [resolvable:$true] %s139_s28 }
  0x1d   :  { %145 = dma.hbm_to_vmem [thread:$0]  %s138_s3, 256, %s140_s28, [#allocation16], %s2987_s29, %s2987_s29, %s2988_s10  }
  0x1e   :  { %s73_s17 = sshll.u32 %s3754_s8, 4  ;;  %s2990_s23 = smov [#allocation3]   ;;  %s74_s17 = int_to_ptr.hbm [resolvable:$true] %s73_s17 }
  0x1f   :  { %s47_s24 = sshll.u32 %s2990_s23, 4  ;;  %s2991_s1 = smov [#allocation8]   ;;  %s48_s24 = int_to_ptr.vmem [resolvable:$true] %s47_s24 }
  0x20   :  { %s75_s2 = sshll.u32 %s2991_s1, 4  ;;  %s99_s27 = sshll.u32 %s3758_s12, 4  ;;  %s76_s2 = int_to_ptr.vmem [resolvable:$true] %s75_s2  ;;  %s100_s27 = int_to_ptr.hbm [resolvable:$true] %s99_s27 }
  0x21   :  { %78 = dma.hbm_to_vmem [thread:$0]  %s74_s17, 16, %s76_s2, [#allocation7]  }
  0x22   :  { %s45_s22 = sshll.u32 %s3779_s30, 4  ;;  %s125_s10 = sshll.u32 %s3761_s15, 4  ;;  %s46_s22 = int_to_ptr.hbm [resolvable:$true] %s45_s22  ;;  %s126_s10 = int_to_ptr.hbm [resolvable:$true] %s125_s10 }
  0x23   :  { %50 = dma.hbm_to_vmem [thread:$0]  %s46_s22, 128, %s48_s24, [#allocation4]  }
  0x24   :  { %s2992_s28 = smov [#allocation11]   ;;  %s2993_s13 = smov [#allocation14]  }
  0x25   :  { %s101_s8 = sshll.u32 %s2992_s28, 4  ;;  %s127_s30 = sshll.u32 %s2993_s13, 4  ;;  %s102_s8 = int_to_ptr.vmem [resolvable:$true] %s101_s8  ;;  %s128_s30 = int_to_ptr.vmem [resolvable:$true] %s127_s30 }
  0x26   :  { %104 = dma.hbm_to_vmem [thread:$0]  %s100_s27, 16, %s102_s8, [#allocation10]  }
  0x27   :  { %s151_s5 = sshll.u32 %s3764_s18, 4  ;;  %s2994_s12 = smov [#allocation17]   ;;  %s152_s5 = int_to_ptr.hbm [resolvable:$true] %s151_s5 }
  0x28   :  { %130 = dma.hbm_to_vmem [thread:$0]  %s126_s10, 16, %s128_s30, [#allocation13]  }
  0x29   :  { %s153_s17 = sshll.u32 %s2994_s12, 4  ;;  %s154_s17 = int_to_ptr.vmem [resolvable:$true] %s153_s17 }
  0x2a   :  { %156 = dma.hbm_to_vmem [thread:$0]  %s152_s5, 16, %s154_s17, [#allocation16]  }
  0x2b   :  { %2970 = dma.done.wait [#allocation4], 128  }
  0x2c   :  { %2971 = vsyncadd [#allocation4], 4294967168 }
  0x2d   :  { %2972 = dma.done.wait [#allocation7], 48  }
  0x2e   :  { %2973 = vsyncadd [#allocation7], 4294967248 }
  0x2f   :  { %2974 = dma.done.wait [#allocation10], 32  }
  0x30   :  { %2975 = vsyncadd [#allocation10], 4294967264 }
  0x31   :  { %2976 = dma.done.wait [#allocation13], 272  }
  0x32   :  { %2977 = vsyncadd [#allocation13], 4294967024 }
  0x33   :  { %2978 = dma.done.wait [#allocation16], 272  }
  0x34   :  { %2979 = vsyncadd [#allocation16], 4294967024  ;;  %v2995_v0 = vmov 0   ;;  %s3780_s23 = sld [smem:[#allocation30_spill]]  ;;  %v2265_v3 = vld [vmem:[%s3752_s6 + $0x30] sm:$0xf]  ;;  %v194_v55 = vlaneseq }
  0x35   :  { %2513 = vset.pattern.permute.xlu1 %v2995_v0  ;;  %2512 = vset.pattern.permute.xlu0 %v2995_v0  ;;  %s3781_s2 = sld [smem:[#allocation29_spill]]  ;;  %v2462_v4 = vld [vmem:[%s3752_s6 + $0x34] sm:$0xf0]  ;;  %v2257_v6 = vld [vmem:[%s3752_s6 + $0x20] sm:$0xf]  ;;  %v2996_v61 = vmov 0.0  }
  0x36   :  { %2514 = vset.pattern.permute.xlu2 %v2995_v0  ;;  %v3159_v5 = vor.u32 %v2462_v4, %v2265_v3  ;;  %v2460_v7 = vld [vmem:[%s3752_s6 + $0x24] sm:$0xf0]  ;;  %v2461_v10 = vld [vmem:[%s3752_s6 + $0x34] sm:$0xf]  ;;  %v2267_v11 = vld [vmem:[%s3752_s6 + $0x38] sm:$0xf0] }
  0x37   :  { %s3782_s1 = sld [smem:[#allocation33_spill]]  ;;  %v3183_v13 = vor.u32 %v2461_v10, %v2267_v11  ;;  %v3194_v17 = vor.u32 %v2460_v7, %v2257_v6  ;;  %v2249_v18 = vld [vmem:[%s3752_s6 + $0x10] sm:$0xf]  ;;  %v2458_v19 = vld [vmem:[%s3752_s6 + $0x14] sm:$0xf0]  ;;  %v3310_v58 = vand.u32 127, %v194_v55 }
  0x38   :  { %544 = vmatpush.bf16.msra.mxu2 %v3159_v5  ;;  %v2459_v22 = vld [vmem:[%s3752_s6 + $0x24] sm:$0xf]  ;;  %v2259_v23 = vld [vmem:[%s3752_s6 + $0x28] sm:$0xf0]  ;;  %v3212_v25 = vor.u32 %v2458_v19, %v2249_v18  ;;  %v2241_v26 = vld [vmem:[%s3752_s6] sm:$0xf] }
  0x39   :  { %557 = vmatpush.bf16.msra.mxu3 %v3183_v13  ;;  %v3209_v24 = vor.u32 %v2459_v22, %v2259_v23  ;;  %v2456_v27 = vld [vmem:[%s3752_s6 + $0x4] sm:$0xf0]  ;;  %v2457_v36 = vld [vmem:[%s3752_s6 + $0x14] sm:$0xf]  ;;  %v2251_v38 = vld [vmem:[%s3752_s6 + $0x18] sm:$0xf0] }
  0x3a   :  { %v236_v1 = vld [vmem:[%s3780_s23] sm:$0xff]  ;;  %v237_v8 = vld [vmem:[%s3780_s23 + $0x8] sm:$0xff]  ;;  %v3225_v29 = vor.u32 %v2456_v27, %v2241_v26  ;;  %v239_v30 = vld [vmem:[%s3780_s23 + $0x18] sm:$0xff]  ;;  %v3258_v39 = vor.u32 %v2457_v36, %v2251_v38  ;;  %vm358_vm6 = vcmask 523264   ;;  %s2999_s18 = smov [#allocation21]   ;;  %s2160_s25 = sshll.u32 %s3767_s21, 4  ;;  %s2161_s25 = int_to_ptr.hbm [resolvable:$true] %s2160_s25 }
  0x3b   :  { %v196_v2 = vld [vmem:[%s3781_s2] sm:$0xff]  ;;  %245 = vperm.xlu1 %2513, %v236_v1   ;;  %v197_v9 = vld [vmem:[%s3781_s2 + $0x8] sm:$0xff]  ;;  %v198_v28 = vld [vmem:[%s3781_s2 + $0x10] sm:$0xff]  ;;  %s2135_s3 = sshll.u32 %s3765_s19, 4  ;;  %s3001_s21 = smov 128   ;;  %s2136_s3 = int_to_ptr.hbm [resolvable:$true] %s2135_s3 }
  0x3c   :  { %205 = vperm.xlu0 %2512, %v196_v2   ;;  %545 = vmatpush.bf16.msra.mxu2 %v3194_v17  ;;  %v2455_v45 = vld [vmem:[%s3752_s6 + $0x4] sm:$0xf]  ;;  %v2243_v46 = vld [vmem:[%s3752_s6 + $0x8] sm:$0xf0]  ;;  %v312_v6 = vld [vmem:[#allocation6] sm:$0x3] }
  0x3d   :  { %v2217_v12 = vld [vmem:[%s3782_s1 + $0x30] sm:$0xf]  ;;  %v2454_v14 = vld [vmem:[%s3782_s1 + $0x34] sm:$0xf0]  ;;  %v2453_v15 = vld [vmem:[%s3782_s1 + $0x34] sm:$0xf]  ;;  %558 = vmatpush.bf16.msra.mxu3 %v3209_v24  ;;  %v3279_v48 = vor.u32 %v2455_v45, %v2243_v46 }
  0x3e   :  { %v2219_v16 = vld [vmem:[%s3782_s1 + $0x38] sm:$0xf0]  ;;  %v2218_v20 = vor.u32 %v2454_v14, %v2217_v12  ;;  %v2209_v31 = vld [vmem:[%s3782_s1 + $0x20] sm:$0xf]  ;;  %v2452_v32 = vld [vmem:[%s3782_s1 + $0x24] sm:$0xf0] }
  0x3f   :  { %v2222_v21 = vor.u32 %v2453_v15, %v2219_v16  ;;  %v2451_v33 = vld [vmem:[%s3782_s1 + $0x24] sm:$0xf]  ;;  %v2210_v34 = vor.u32 %v2452_v32, %v2209_v31  ;;  %v2211_v35 = vld [vmem:[%s3782_s1 + $0x28] sm:$0xf0]  ;;  %v2201_v40 = vld [vmem:[%s3782_s1 + $0x10] sm:$0xf] }
  0x40   :  { %375 = vmatpush.bf16.msra.mxu0 %v2218_v20  ;;  %546 = vmatpush.bf16.msra.mxu2 %v3212_v25  ;;  %v2214_v37 = vor.u32 %v2451_v33, %v2211_v35  ;;  %v2450_v41 = vld [vmem:[%s3782_s1 + $0x14] sm:$0xf0]  ;;  %v2449_v42 = vld [vmem:[%s3782_s1 + $0x14] sm:$0xf]  ;;  %v2203_v44 = vld [vmem:[%s3782_s1 + $0x18] sm:$0xf0] }
  0x41   :  { %404 = vmatpush.bf16.msra.mxu1 %v2222_v21  ;;  %v2202_v43 = vor.u32 %v2450_v41, %v2201_v40  ;;  %559 = vmatpush.bf16.msra.mxu3 %v3258_v39  ;;  %v2206_v47 = vor.u32 %v2449_v42, %v2203_v44  ;;  %v2193_v49 = vld [vmem:[%s3782_s1] sm:$0xf]  ;;  %v2448_v50 = vld [vmem:[%s3782_s1 + $0x4] sm:$0xf0]  ;;  %v2447_v51 = vld [vmem:[%s3782_s1 + $0x4] sm:$0xf] }
  0x42   :  { %v2194_v52 = vor.u32 %v2448_v50, %v2193_v49  ;;  %v2195_v53 = vld [vmem:[%s3782_s1 + $0x8] sm:$0xf0]  ;;  %v3329_v7 = vperm.slane %v312_v6, 0  ;;  %v3332_v15 = vperm.slane %v312_v6, 1  ;;  %s3783_s1 = sld [smem:[#allocation31_spill]]  ;;  %s3002_s10 = smov 8  }
  0x43   :  { %248 = vperm.xlu1 %2513, %v237_v8   ;;  %v2198_v54 = vor.u32 %v2447_v51, %v2195_v53 }
  0x44   :  { %208 = vperm.xlu0 %2512, %v197_v9   ;;  %547 = vmatpush.bf16.msra.mxu2 %v3225_v29 }
  0x45   :  { %376 = vmatpush.bf16.msra.mxu0 %v2210_v34  ;;  %405 = vmatpush.bf16.msra.mxu1 %v2214_v37 }
  0x46   :  { %560 = vmatpush.bf16.msra.mxu3 %v3279_v48 }
  0x47   :  { %548 = vmatmul.bf16.vlgmr.msra.gmra.mxu2 %v2995_v0 }
  0x48   :  { %627 = vmatpush.bf16.msrb.mxu2 %v3159_v5 }
  0x49   :  { %377 = vmatpush.bf16.msra.mxu0 %v2202_v43  ;;  %406 = vmatpush.bf16.msra.mxu1 %v2206_v47 }
  0x4a   :  { %640 = vmatpush.bf16.msrb.mxu3 %v3183_v13 }
  0x4b   :  { %211 = vperm.xlu1 %2513, %v198_v28   ;;  %561 = vmatmul.bf16.vlgmr.msra.gmra.mxu3 %v2995_v0 }
  0x4c   :  { %628 = vmatpush.bf16.msrb.mxu2 %v3194_v17 }
  0x4d   :  { %378 = vmatpush.bf16.msra.mxu0 %v2194_v52  ;;  %407 = vmatpush.bf16.msra.mxu1 %v2198_v54 }
  0x4e   :  { %641 = vmatpush.bf16.msrb.mxu3 %v3209_v24 }
  0x50   :  { %629 = vmatpush.bf16.msrb.mxu2 %v3212_v25 }
  0x51   :  { %876 = vmatpush.bf16.msrb.mxu0 %v3159_v5  ;;  %889 = vmatpush.bf16.msrb.mxu1 %v3183_v13 }
  0x52   :  { %642 = vmatpush.bf16.msrb.mxu3 %v3258_v39 }
  0x53   :  { %254 = vperm.xlu1 %2513, %v239_v30  }
  0x54   :  { %630 = vmatpush.bf16.msrb.mxu2 %v3225_v29 }
  0x55   :  { %877 = vmatpush.bf16.msrb.mxu0 %v3194_v17  ;;  %890 = vmatpush.bf16.msrb.mxu1 %v3209_v24 }
  0x56   :  { %643 = vmatpush.bf16.msrb.mxu3 %v3279_v48 }
  0x58   :  { %710 = vmatpush.bf16.msra.mxu2 %v3159_v5 }
  0x59   :  { %878 = vmatpush.bf16.msrb.mxu0 %v3212_v25  ;;  %891 = vmatpush.bf16.msrb.mxu1 %v3258_v39 }
  0x5a   :  { %723 = vmatpush.bf16.msra.mxu3 %v3183_v13 }
  0x5c   :  { %711 = vmatpush.bf16.msra.mxu2 %v3194_v17 }
  0x5d   :  { %879 = vmatpush.bf16.msrb.mxu0 %v3225_v29  ;;  %892 = vmatpush.bf16.msrb.mxu1 %v3279_v48 }
  0x5e   :  { %724 = vmatpush.bf16.msra.mxu3 %v3209_v24 }
  0x60   :  { %712 = vmatpush.bf16.msra.mxu2 %v3212_v25 }
  0x62   :  { %725 = vmatpush.bf16.msra.mxu3 %v3258_v39 }
  0x64   :  { %713 = vmatpush.bf16.msra.mxu2 %v3225_v29 }
  0x66   :  { %726 = vmatpush.bf16.msra.mxu3 %v3279_v48 }
  0xad   :  { %v246_v56 = vpop.permute.xlu1 %245 }
  0xae   :  { %v206_v57 = vpop.permute.xlu0 %205  ;;  %vm268_vm0 = vcmp.eq.s32.totalorder %v3310_v58, %v246_v56  ;;  %v199_v56 = vld [vmem:[%s3781_s2 + $0x18] sm:$0xff] }
  0xaf   :  { %vm228_vm1 = vcmp.eq.s32.totalorder %v3310_v58, %v206_v57 }
  0xb0   :  { %vm276_vm2 = vmor %vm228_vm1, %vm268_vm0 }
  0xb1   :  { %v2183_v62 = vsel %vm276_vm2, 1.0, %v2996_v61 }
  0xb5   :  { %v249_v59 = vpop.permute.xlu1 %248 }
  0xb6   :  { %v209_v60 = vpop.permute.xlu0 %208  ;;  %vm269_vm3 = vcmp.eq.s32.totalorder %v3310_v58, %v249_v59 }
  0xb7   :  { %vm229_vm4 = vcmp.eq.s32.totalorder %v3310_v58, %v209_v60 }
  0xb8   :  { %vm277_vm5 = vmor %vm229_vm4, %vm269_vm3 }
  0xb9   :  { %v2184_v63 = vsel %vm277_vm5, 1.0, %v2996_v61 }
  0xba   :  { %v300_v0 = vpack.c.bf16 %v2184_v63, %v2183_v62 }
  0xbc   :  { %2223 = vmatmul.msk.bf16.vlgmr.msra.gmra.mxu0 %vm358_vm6, %v300_v0  ;;  %2227 = vmatmul.msk.bf16.vlgmr.msra.gmra.mxu1 %vm358_vm6, %v300_v0 }
  0xbd   :  { %1042 = vmatpush.bf16.msra.mxu0 %v3159_v5  ;;  %1055 = vmatpush.bf16.msra.mxu1 %v3183_v13 }
  0xc1   :  { %1043 = vmatpush.bf16.msra.mxu0 %v3194_v17  ;;  %1056 = vmatpush.bf16.msra.mxu1 %v3209_v24 }
  0xc5   :  { %1044 = vmatpush.bf16.msra.mxu0 %v3212_v25  ;;  %1057 = vmatpush.bf16.msra.mxu1 %v3258_v39 }
  0xc9   :  { %1045 = vmatpush.bf16.msra.mxu0 %v3225_v29  ;;  %1058 = vmatpush.bf16.msra.mxu1 %v3279_v48 }
  0xca   :  { %v549_v1 = vpop.f32.mrf.mxu2 }
  0xce   :  { %v562_v3 = vpop.f32.mrf.mxu3 }
  0xd2   :  { %v551_v2 = vpop.f32.mrf.mxu2 }
  0xd6   :  { %v564_v4 = vpop.f32.mrf.mxu3 }
 0x139   :  { %v380_v8 = vpop.f32.mrf.mxu0  ;;  %v409_v16 = vpop.f32.mrf.mxu1 }
 0x13a   :  { %v381_v9 = vadd.f32 %v380_v8, %v3329_v7  ;;  %v410_v18 = vadd.f32 %v409_v16, %v3332_v15 }
 0x13c   :  { %v566_v10 = vadd.f32 %v549_v1, %v381_v9  ;;  %v567_v20 = vadd.f32 %v562_v3, %v410_v18 }
 0x13e   :  { %v2271_v11 = vmul.f32 -1.442695, %v566_v10  ;;  %v2272_v35 = vmul.f32 -1.442695, %v567_v20 }
 0x140   :  { %2520 = vpow2.f32 %v2271_v11 }
 0x141   :  { %v382_v59 = vpop.f32.mrf.mxu0  ;;  %v411_v8 = vpop.f32.mrf.mxu1 }
 0x142   :  { %v383_v60 = vadd.f32 %v382_v59, %v3329_v7  ;;  %v412_v9 = vadd.f32 %v411_v8, %v3332_v15 }
 0x146   :  { %v2521_v12 = vpop.eup %2520 }
 0x147   :  { %v574_v14 = vadd.f32 1.0, %v2521_v12 }
 0x149   :  { %2522 = vrcp.f32 %v574_v14  ;;  %v587_v23 = vand.u32 2147483648, %v574_v14  ;;  %v585_v27 = vand.u32 2147483647, %v574_v14  ;;  %vm581_vm8 = vweird.f32 %v574_v14 }
 0x14a   :  { %2524 = vtanh.f32 %v567_v20 }
 0x14b   :  { %v588_v30 = vor.u32 1.1754944e-38, %v587_v23  ;;  %vm586_vm10 = vcmp.eq.f32.partialorder %v585_v27, 8.507059e+37  ;;  %2526 = vpow2.f32 %v2272_v35  ;;  %v212_v35 = vpop.permute.xlu1 %211 }
 0x14f   :  { %v2523_v19 = vpop.eup %2522 }
 0x150   :  { %v577_v21 = vmul.f32 %v2523_v19, %v574_v14  ;;  %vm582_vm7 = vweird.f32 %v2523_v19  ;;  %v2525_v32 = vpop.eup %2524 }
 0x151   :  { %vm583_vm9 = vmor %vm581_vm8, %vm582_vm7  ;;  %v2527_v36 = vpop.eup %2526 }
 0x152   :  { %v578_v22 = vsub.f32 1.0, %v577_v21  ;;  %v575_v37 = vadd.f32 1.0, %v2527_v36 }
 0x154   :  { %v579_v26 = vmul.f32 %v2523_v19, %v578_v22  ;;  %2528 = vrcp.f32 %v575_v37  ;;  %v602_v47 = vand.u32 2147483648, %v575_v37  ;;  %vm596_vm12 = vweird.f32 %v575_v37 }
 0x155   :  { %v600_v49 = vand.u32 2147483647, %v575_v37 }
 0x156   :  { %v580_v28 = vadd.f32 %v2523_v19, %v579_v26  ;;  %v603_v51 = vor.u32 1.1754944e-38, %v602_v47 }
 0x157   :  { %vm601_vm14 = vcmp.eq.f32.partialorder %v600_v49, 8.507059e+37 }
 0x158   :  { %v584_v31 = vsel %vm583_vm9, %v2523_v19, %v580_v28  ;;  %v238_v28 = vld [vmem:[%s3780_s23 + $0x10] sm:$0xff] }
 0x159   :  { %v589_v33 = vsel %vm586_vm10, %v588_v30, %v584_v31 }
 0x15a   :  { %v608_v34 = vmul.f32 %v2525_v32, %v589_v33  ;;  %v2529_v38 = vpop.eup %2528  ;;  %v607_v43 = vmul.f32 0.0, %v589_v33 }
 0x15b   :  { %v592_v40 = vmul.f32 %v2529_v38, %v575_v37  ;;  %vm597_vm11 = vweird.f32 %v2529_v38 }
 0x15c   :  { %610 = vrot.lane.b32.xlu2 %v608_v34, %s2987_s29  ;;  %vm598_vm13 = vmor %vm596_vm12, %vm597_vm11  ;;  %vm230_vm11 = vcmp.eq.s32.totalorder %v3310_v58, %v212_v35 }
 0x15d   :  { %v593_v41 = vsub.f32 1.0, %v592_v40 }
 0x15f   :  { %v594_v42 = vmul.f32 %v2529_v38, %v593_v41 }
 0x161   :  { %v595_v46 = vadd.f32 %v2529_v38, %v594_v42 }
 0x163   :  { %v599_v50 = vsel %vm598_vm13, %v2529_v38, %v595_v46  ;;  %v255_v46 = vpop.permute.xlu1 %254 }
 0x164   :  { %v604_v53 = vsel %vm601_vm14, %v603_v51, %v599_v50  ;;  %vm271_vm8 = vcmp.eq.s32.totalorder %v3310_v58, %v255_v46 }
 0x1b6   :  { %v611_v44 = vpop.permute.xlu2 %610 }
 0x1b7   :  { %v3336_v45 = vadd.f32 %v611_v44, %v607_v43 }
 0x1b9   :  { %2530 = vtanh.f32 %v3336_v45 }
 0x1bf   :  { %v2531_v52 = vpop.eup %2530 }
 0x1c0   :  { %v615_v54 = vmul.f32 %v2531_v52, %v604_v53 }
 0x1c2   :  { %v616_v55 = vpack.c.bf16 %v615_v54, %v615_v54 }
 0x1c4   :  { %618 = vrot.lane.b32.xlu2 %v616_v55, %s2987_s29 }
 0x1cc   :  { %214 = vperm.xlu2 %2514, %v199_v56  }
 0x21e   :  { %v619_v57 = vpop.permute.xlu2 %618 }
 0x21f   :  { %2273 = vmatmul.msk.bf16.vlgmr.msrb.gmra.mxu2 %vm358_vm6, %v619_v57  ;;  %2274 = vmatmul.msk.bf16.vlgmr.msrb.gmra.mxu3 %vm358_vm6, %v619_v57 }
 0x220   :  { %793 = vmatpush.bf16.msrb.mxu2 %v3159_v5  ;;  %806 = vmatpush.bf16.msrb.mxu3 %v3183_v13 }
 0x224   :  { %794 = vmatpush.bf16.msrb.mxu2 %v3194_v17  ;;  %807 = vmatpush.bf16.msrb.mxu3 %v3209_v24 }
 0x226   :  { %v215_v42 = vpop.permute.xlu2 %214 }
 0x227   :  { %vm231_vm5 = vcmp.eq.s32.totalorder %v3310_v58, %v215_v42 }
 0x228   :  { %795 = vmatpush.bf16.msrb.mxu2 %v3212_v25  ;;  %808 = vmatpush.bf16.msrb.mxu3 %v3258_v39  ;;  %vm279_vm9 = vmor %vm231_vm5, %vm271_vm8 }
 0x229   :  { %v2186_v54 = vsel %vm279_vm9, 1.0, %v2996_v61 }
 0x22c   :  { %796 = vmatpush.bf16.msrb.mxu2 %v3225_v29  ;;  %809 = vmatpush.bf16.msrb.mxu3 %v3279_v48 }
 0x2a2   :  { %v632_v62 = vpop.f32.mrf.mxu2  ;;  %v645_v63 = vpop.f32.mrf.mxu3 }
 0x2a3   :  { %v649_v0 = vadd.f32 %v632_v62, %v383_v60  ;;  %v650_v11 = vadd.f32 %v645_v63, %v412_v9 }
 0x2a5   :  { %v2275_v1 = vmul.f32 -1.442695, %v649_v0  ;;  %v2276_v30 = vmul.f32 -1.442695, %v650_v11 }
 0x2a7   :  { %2532 = vpow2.f32 %v2275_v1 }
 0x2aa   :  { %v634_v2 = vpop.f32.mrf.mxu2  ;;  %v647_v3 = vpop.f32.mrf.mxu3 }
 0x2ad   :  { %v2533_v4 = vpop.eup %2532 }
 0x2ae   :  { %v657_v6 = vadd.f32 1.0, %v2533_v4 }
 0x2b0   :  { %2534 = vrcp.f32 %v657_v6  ;;  %v670_v16 = vand.u32 2147483648, %v657_v6  ;;  %v668_v19 = vand.u32 2147483647, %v657_v6  ;;  %vm664_vm0 = vweird.f32 %v657_v6 }
 0x2b1   :  { %2536 = vtanh.f32 %v650_v11 }
 0x2b2   :  { %v671_v21 = vor.u32 1.1754944e-38, %v670_v16  ;;  %vm669_vm2 = vcmp.eq.f32.partialorder %v668_v19, 8.507059e+37  ;;  %2538 = vpow2.f32 %v2276_v30  ;;  %v200_v30 = vld [vmem:[%s3781_s2 + $0x20] sm:$0xff] }
 0x2b6   :  { %v2535_v10 = vpop.eup %2534 }
 0x2b7   :  { %v660_v12 = vmul.f32 %v2535_v10, %v657_v6  ;;  %vm665_vm15 = vweird.f32 %v2535_v10  ;;  %v2537_v23 = vpop.eup %2536 }
 0x2b8   :  { %vm666_vm1 = vmor %vm664_vm0, %vm665_vm15  ;;  %v2539_v31 = vpop.eup %2538 }
 0x2b9   :  { %v661_v14 = vsub.f32 1.0, %v660_v12  ;;  %v658_v32 = vadd.f32 1.0, %v2539_v31  ;;  %v241_v31 = vld [vmem:[%s3780_s23 + $0x28] sm:$0xff] }
 0x2bb   :  { %v662_v18 = vmul.f32 %v2535_v10, %v661_v14  ;;  %2540 = vrcp.f32 %v658_v32  ;;  %v685_v44 = vand.u32 2147483648, %v658_v32  ;;  %vm679_vm4 = vweird.f32 %v658_v32 }
 0x2bc   :  { %v683_v47 = vand.u32 2147483647, %v658_v32 }
 0x2bd   :  { %v663_v20 = vadd.f32 %v2535_v10, %v662_v18  ;;  %v686_v50 = vor.u32 1.1754944e-38, %v685_v44 }
 0x2be   :  { %vm684_vm10 = vcmp.eq.f32.partialorder %v683_v47, 8.507059e+37 }
 0x2bf   :  { %v667_v22 = vsel %vm666_vm1, %v2535_v10, %v663_v20 }
 0x2c0   :  { %v672_v26 = vsel %vm669_vm2, %v671_v21, %v667_v22 }
 0x2c1   :  { %v691_v27 = vmul.f32 %v2537_v23, %v672_v26  ;;  %v2541_v33 = vpop.eup %2540  ;;  %v690_v38 = vmul.f32 %v672_v26, %v3336_v45 }
 0x2c2   :  { %v675_v34 = vmul.f32 %v2541_v33, %v658_v32  ;;  %vm680_vm3 = vweird.f32 %v2541_v33  ;;  %v242_v32 = vld [vmem:[%s3780_s23 + $0x30] sm:$0xff] }
 0x2c3   :  { %693 = vrot.lane.b32.xlu0 %v691_v27, %s2987_s29  ;;  %vm681_vm7 = vmor %vm679_vm4, %vm680_vm3 }
 0x2c4   :  { %v676_v36 = vsub.f32 1.0, %v675_v34 }
 0x2c6   :  { %v677_v37 = vmul.f32 %v2541_v33, %v676_v36 }
 0x2c8   :  { %v678_v43 = vadd.f32 %v2541_v33, %v677_v37 }
 0x2ca   :  { %v682_v49 = vsel %vm681_vm7, %v2541_v33, %v678_v43 }
 0x2cb   :  { %251 = vperm.xlu0 %2512, %v238_v28   ;;  %v687_v52 = vsel %vm684_vm10, %v686_v50, %v682_v49 }
 0x335   :  { %v694_v40 = vpop.permute.xlu0 %693 }
 0x336   :  { %v3360_v41 = vadd.f32 %v694_v40, %v690_v38 }
 0x338   :  { %2542 = vtanh.f32 %v3360_v41 }
 0x33d   :  { %v252_v45 = vpop.permute.xlu0 %251 }
 0x33e   :  { %v2543_v51 = vpop.eup %2542  ;;  %vm270_vm12 = vcmp.eq.s32.totalorder %v3310_v58, %v252_v45 }
 0x33f   :  { %vm278_vm13 = vmor %vm230_vm11, %vm270_vm12  ;;  %v698_v53 = vmul.f32 %v2543_v51, %v687_v52 }
 0x340   :  { %v2185_v55 = vsel %vm278_vm13, 1.0, %v2996_v61 }
 0x341   :  { %v301_v56 = vpack.c.bf16 %v2186_v54, %v2185_v55  ;;  %v699_v57 = vpack.c.bf16 %v698_v53, %v698_v53  ;;  %v202_v55 = vld [vmem:[%s3781_s2 + $0x30] sm:$0xff] }
 0x343   :  { %701 = vrot.lane.b32.xlu2 %v699_v57, %s2987_s29  ;;  %2224 = vmatmul.msk.bf16.gmra.mxu0 %vm358_vm6, %v301_v56 }
 0x344   :  { %2228 = vmatmul.msk.bf16.gmra.mxu1 %vm358_vm6, %v301_v56  ;;  %v243_v56 = vld [vmem:[%s3780_s23 + $0x38] sm:$0xff] }
 0x39d   :  { %v702_v59 = vpop.permute.xlu2 %701 }
 0x39e   :  { %2277 = vmatmul.msk.bf16.vlgmr.msra.gmra.mxu2 %vm358_vm6, %v702_v59  ;;  %2278 = vmatmul.msk.bf16.vlgmr.msra.gmra.mxu3 %vm358_vm6, %v702_v59 }
 0x39f   :  { %959 = vmatpush.bf16.msra.mxu2 %v3159_v5  ;;  %972 = vmatpush.bf16.msra.mxu3 %v3183_v13 }
 0x3a3   :  { %960 = vmatpush.bf16.msra.mxu2 %v3194_v17  ;;  %973 = vmatpush.bf16.msra.mxu3 %v3209_v24 }
 0x3a7   :  { %961 = vmatpush.bf16.msra.mxu2 %v3212_v25  ;;  %974 = vmatpush.bf16.msra.mxu3 %v3258_v39 }
 0x3ab   :  { %962 = vmatpush.bf16.msra.mxu2 %v3225_v29  ;;  %975 = vmatpush.bf16.msra.mxu3 %v3279_v48 }
 0x3c0   :  { %v385_v60 = vpop.f32.mrf.mxu0 }
 0x3c1   :  { %v386_v62 = vadd.f32 %v385_v60, %v3329_v7  ;;  %v414_v9 = vpop.f32.mrf.mxu1 }
 0x3c2   :  { %v415_v10 = vadd.f32 %v414_v9, %v3332_v15 }
 0x3c8   :  { %v387_v59 = vpop.f32.mrf.mxu0 }
 0x3c9   :  { %v388_v60 = vadd.f32 %v387_v59, %v3329_v7 }
 0x421   :  { %v715_v63 = vpop.f32.mrf.mxu2  ;;  %v728_v0 = vpop.f32.mrf.mxu3 }
 0x422   :  { %v732_v1 = vadd.f32 %v715_v63, %v386_v62  ;;  %v733_v12 = vadd.f32 %v728_v0, %v415_v10 }
 0x424   :  { %v2279_v2 = vmul.f32 -1.442695, %v732_v1  ;;  %v2280_v33 = vmul.f32 -1.442695, %v733_v12 }
 0x426   :  { %2544 = vpow2.f32 %v2279_v2 }
 0x429   :  { %v717_v3 = vpop.f32.mrf.mxu2  ;;  %v730_v4 = vpop.f32.mrf.mxu3 }
 0x42c   :  { %v2545_v6 = vpop.eup %2544 }
 0x42d   :  { %v740_v8 = vadd.f32 1.0, %v2545_v6 }
 0x42f   :  { %2546 = vrcp.f32 %v740_v8  ;;  %v753_v18 = vand.u32 2147483648, %v740_v8  ;;  %v751_v20 = vand.u32 2147483647, %v740_v8  ;;  %vm747_vm15 = vweird.f32 %v740_v8 }
 0x430   :  { %2548 = vtanh.f32 %v733_v12 }
 0x431   :  { %v754_v22 = vor.u32 1.1754944e-38, %v753_v18  ;;  %vm752_vm1 = vcmp.eq.f32.partialorder %v751_v20, 8.507059e+37  ;;  %2550 = vpow2.f32 %v2280_v33  ;;  %v240_v18 = vld [vmem:[%s3780_s23 + $0x20] sm:$0xff]  ;;  %s2158_s23 = sshll.u32 %s2999_s18, 4  ;;  %s2159_s23 = int_to_ptr.vmem [resolvable:$true] %s2158_s23 }
 0x435   :  { %v2547_v11 = vpop.eup %2546 }
 0x436   :  { %v743_v14 = vmul.f32 %v2547_v11, %v740_v8  ;;  %vm748_vm14 = vweird.f32 %v2547_v11  ;;  %v2549_v26 = vpop.eup %2548 }
 0x437   :  { %vm749_vm0 = vmor %vm747_vm15, %vm748_vm14  ;;  %v2551_v34 = vpop.eup %2550 }
 0x438   :  { %v744_v16 = vsub.f32 1.0, %v743_v14  ;;  %v741_v35 = vadd.f32 1.0, %v2551_v34 }
 0x43a   :  { %v745_v19 = vmul.f32 %v2547_v11, %v744_v16  ;;  %2552 = vrcp.f32 %v741_v35  ;;  %v768_v47 = vand.u32 2147483648, %v741_v35  ;;  %vm762_vm3 = vweird.f32 %v741_v35 }
 0x43b   :  { %v766_v49 = vand.u32 2147483647, %v741_v35 }
 0x43c   :  { %v746_v21 = vadd.f32 %v2547_v11, %v745_v19  ;;  %v769_v45 = vor.u32 1.1754944e-38, %v768_v47  ;;  %v203_v19 = vld [vmem:[%s3781_s2 + $0x38] sm:$0xff] }
 0x43d   :  { %vm767_vm5 = vcmp.eq.f32.partialorder %v766_v49, 8.507059e+37 }
 0x43e   :  { %v750_v23 = vsel %vm749_vm0, %v2547_v11, %v746_v21 }
 0x43f   :  { %v755_v27 = vsel %vm752_vm1, %v754_v22, %v750_v23 }
 0x440   :  { %v774_v28 = vmul.f32 %v2549_v26, %v755_v27  ;;  %v2553_v36 = vpop.eup %2552  ;;  %v773_v42 = vmul.f32 %v755_v27, %v3360_v41  ;;  %v201_v41 = vld [vmem:[%s3781_s2 + $0x28] sm:$0xff] }
 0x441   :  { %v758_v37 = vmul.f32 %v2553_v36, %v741_v35  ;;  %vm763_vm2 = vweird.f32 %v2553_v36 }
 0x442   :  { %776 = vrot.lane.b32.xlu0 %v774_v28, %s2987_s29  ;;  %vm764_vm4 = vmor %vm762_vm3, %vm763_vm2 }
 0x443   :  { %v759_v38 = vsub.f32 1.0, %v758_v37 }
 0x445   :  { %v760_v40 = vmul.f32 %v2553_v36, %v759_v38 }
 0x447   :  { %v761_v46 = vadd.f32 %v2553_v36, %v760_v40 }
 0x449   :  { %v765_v50 = vsel %vm764_vm4, %v2553_v36, %v761_v46 }
 0x44a   :  { %217 = vperm.xlu0 %2512, %v200_v30   ;;  %v770_v52 = vsel %vm767_vm5, %v769_v45, %v765_v50 }
 0x452   :  { %260 = vperm.xlu0 %2512, %v241_v31  }
 0x45a   :  { %263 = vperm.xlu0 %2512, %v242_v32  }
 0x4b4   :  { %v777_v43 = vpop.permute.xlu0 %776 }
 0x4b5   :  { %v3395_v44 = vadd.f32 %v777_v43, %v773_v42 }
 0x4b7   :  { %2554 = vtanh.f32 %v3395_v44 }
 0x4bc   :  { %v218_v27 = vpop.permute.xlu0 %217 }
 0x4bd   :  { %v2555_v51 = vpop.eup %2554  ;;  %vm232_vm2 = vcmp.eq.s32.totalorder %v3310_v58, %v218_v27 }
 0x4be   :  { %v781_v53 = vmul.f32 %v2555_v51, %v770_v52 }
 0x4c0   :  { %v782_v54 = vpack.c.bf16 %v781_v53, %v781_v53 }
 0x4c2   :  { %784 = vrot.lane.b32.xlu1 %v782_v54, %s2987_s29 }
 0x4c4   :  { %v261_v37 = vpop.permute.xlu0 %260 }
 0x4c5   :  { %vm273_vm15 = vcmp.eq.s32.totalorder %v3310_v58, %v261_v37 }
 0x4ca   :  { %220 = vperm.xlu1 %2513, %v201_v41  }
 0x4cc   :  { %v264_v41 = vpop.permute.xlu0 %263 }
 0x4d2   :  { %223 = vperm.xlu1 %2513, %v202_v55  }
 0x4da   :  { %266 = vperm.xlu1 %2513, %v243_v56  }
 0x534   :  { %v785_v57 = vpop.permute.xlu1 %784 }
 0x535   :  { %2281 = vmatmul.msk.bf16.vlgmr.msrb.gmra.mxu2 %vm358_vm6, %v785_v57  ;;  %2282 = vmatmul.msk.bf16.vlgmr.msrb.gmra.mxu3 %vm358_vm6, %v785_v57 }
 0x536   :  { %1125 = vmatpush.bf16.msrb.mxu2 %v3159_v5  ;;  %1138 = vmatpush.bf16.msrb.mxu3 %v3183_v13 }
 0x53a   :  { %1126 = vmatpush.bf16.msrb.mxu2 %v3194_v17  ;;  %1139 = vmatpush.bf16.msrb.mxu3 %v3209_v24 }
 0x53c   :  { %v221_v30 = vpop.permute.xlu1 %220 }
 0x53d   :  { %vm233_vm13 = vcmp.eq.s32.totalorder %v3310_v58, %v221_v30 }
 0x53e   :  { %1127 = vmatpush.bf16.msrb.mxu2 %v3212_v25  ;;  %1140 = vmatpush.bf16.msrb.mxu3 %v3258_v39  ;;  %v416_v25 = vpop.f32.mrf.mxu1  ;;  %vm281_vm0 = vmor %vm233_vm13, %vm273_vm15 }
 0x53f   :  { %v417_v39 = vadd.f32 %v416_v25, %v3332_v15  ;;  %v2188_v50 = vsel %vm281_vm0, 1.0, %v2996_v61 }
 0x542   :  { %1128 = vmatpush.bf16.msrb.mxu2 %v3225_v29  ;;  %1141 = vmatpush.bf16.msrb.mxu3 %v3279_v48 }
 0x544   :  { %v224_v43 = vpop.permute.xlu1 %223 }
 0x54c   :  { %v267_v54 = vpop.permute.xlu1 %266 }
 0x5b8   :  { %v798_v62 = vpop.f32.mrf.mxu2  ;;  %v811_v63 = vpop.f32.mrf.mxu3 }
 0x5b9   :  { %v815_v5 = vadd.f32 %v798_v62, %v388_v60  ;;  %v816_v29 = vadd.f32 %v811_v63, %v417_v39 }
 0x5bb   :  { %v2283_v0 = vmul.f32 -1.442695, %v815_v5  ;;  %v2284_v20 = vmul.f32 -1.442695, %v816_v29 }
 0x5bd   :  { %2556 = vpow2.f32 %v2283_v0 }
 0x5c0   :  { %v800_v13 = vpop.f32.mrf.mxu2  ;;  %v813_v17 = vpop.f32.mrf.mxu3 }
 0x5c3   :  { %v2557_v1 = vpop.eup %2556 }
 0x5c4   :  { %v823_v24 = vadd.f32 1.0, %v2557_v1 }
 0x5c6   :  { %2558 = vrcp.f32 %v823_v24  ;;  %v836_v4 = vand.u32 2147483648, %v823_v24  ;;  %v834_v8 = vand.u32 2147483647, %v823_v24  ;;  %vm830_vm8 = vweird.f32 %v823_v24 }
 0x5c7   :  { %2560 = vtanh.f32 %v816_v29 }
 0x5c8   :  { %v837_v10 = vor.u32 1.1754944e-38, %v836_v4  ;;  %vm835_vm10 = vcmp.eq.f32.partialorder %v834_v8, 8.507059e+37  ;;  %2562 = vpow2.f32 %v2284_v20 }
 0x5cc   :  { %v2559_v2 = vpop.eup %2558 }
 0x5cd   :  { %v826_v3 = vmul.f32 %v2559_v2, %v823_v24  ;;  %vm831_vm7 = vweird.f32 %v2559_v2  ;;  %v2561_v12 = vpop.eup %2560 }
 0x5ce   :  { %vm832_vm9 = vmor %vm830_vm8, %vm831_vm7  ;;  %v2563_v21 = vpop.eup %2562  ;;  %vm234_vm7 = vcmp.eq.s32.totalorder %v3310_v58, %v224_v43  ;;  %vm275_vm8 = vcmp.eq.s32.totalorder %v3310_v58, %v267_v54 }
 0x5cf   :  { %v827_v48 = vsub.f32 1.0, %v826_v3  ;;  %v824_v22 = vadd.f32 1.0, %v2563_v21 }
 0x5d1   :  { %v828_v6 = vmul.f32 %v2559_v2, %v827_v48  ;;  %2564 = vrcp.f32 %v824_v22  ;;  %v851_v36 = vand.u32 2147483648, %v824_v22  ;;  %vm845_vm12 = vweird.f32 %v824_v22 }
 0x5d2   :  { %v849_v38 = vand.u32 2147483647, %v824_v22 }
 0x5d3   :  { %v829_v9 = vadd.f32 %v2559_v2, %v828_v6  ;;  %v852_v42 = vor.u32 1.1754944e-38, %v851_v36 }
 0x5d4   :  { %vm850_vm1 = vcmp.eq.f32.partialorder %v849_v38, 8.507059e+37 }
 0x5d5   :  { %v833_v11 = vsel %vm832_vm9, %v2559_v2, %v829_v9 }
 0x5d6   :  { %v838_v14 = vsel %vm835_vm10, %v837_v10, %v833_v11  ;;  %vm274_vm10 = vcmp.eq.s32.totalorder %v3310_v58, %v264_v41 }
 0x5d7   :  { %v857_v16 = vmul.f32 %v2561_v12, %v838_v14  ;;  %v2565_v23 = vpop.eup %2564  ;;  %v856_v32 = vmul.f32 %v838_v14, %v3395_v44 }
 0x5d8   :  { %v841_v26 = vmul.f32 %v2565_v23, %v824_v22  ;;  %vm846_vm11 = vweird.f32 %v2565_v23 }
 0x5d9   :  { %859 = vrot.lane.b32.xlu2 %v857_v16, %s2987_s29  ;;  %vm847_vm14 = vmor %vm845_vm12, %vm846_vm11 }
 0x5da   :  { %v842_v28 = vsub.f32 1.0, %v841_v26  ;;  %vm282_vm11 = vmor %vm234_vm7, %vm274_vm10 }
 0x5db   :  { %v2189_v56 = vsel %vm282_vm11, 1.0, %v2996_v61 }
 0x5dc   :  { %v843_v31 = vmul.f32 %v2565_v23, %v842_v28 }
 0x5de   :  { %v844_v35 = vadd.f32 %v2565_v23, %v843_v31 }
 0x5e0   :  { %v848_v40 = vsel %vm847_vm14, %v2565_v23, %v844_v35 }
 0x5e1   :  { %257 = vperm.xlu2 %2514, %v240_v18   ;;  %v853_v47 = vsel %vm850_vm1, %v852_v42, %v848_v40 }
 0x5e9   :  { %226 = vperm.xlu2 %2514, %v203_v19  }
 0x633   :  { %v860_v33 = vpop.permute.xlu2 %859 }
 0x634   :  { %v3428_v34 = vadd.f32 %v860_v33, %v856_v32 }
 0x636   :  { %2566 = vtanh.f32 %v3428_v34 }
 0x63b   :  { %v258_v44 = vpop.permute.xlu2 %257 }
 0x63c   :  { %v2567_v46 = vpop.eup %2566  ;;  %vm272_vm3 = vcmp.eq.s32.totalorder %v3310_v58, %v258_v44 }
 0x63d   :  { %vm280_vm4 = vmor %vm232_vm2, %vm272_vm3  ;;  %v864_v49 = vmul.f32 %v2567_v46, %v853_v47 }
 0x63e   :  { %v2187_v45 = vsel %vm280_vm4, 1.0, %v2996_v61 }
 0x63f   :  { %v302_v51 = vpack.c.bf16 %v2188_v50, %v2187_v45  ;;  %v865_v52 = vpack.c.bf16 %v864_v49, %v864_v49 }
 0x641   :  { %2225 = vmatmul.msk.bf16.gmra.mxu0 %vm358_vm6, %v302_v51  ;;  %2229 = vmatmul.msk.bf16.gmra.mxu1 %vm358_vm6, %v302_v51 }
 0x642   :  { %867 = vrot.lane.b32.xlu2 %v865_v52, %s2987_s29 }
 0x643   :  { %v227_v53 = vpop.permute.xlu2 %226 }
 0x644   :  { %vm235_vm5 = vcmp.eq.s32.totalorder %v3310_v58, %v227_v53 }
 0x645   :  { %vm283_vm9 = vmor %vm235_vm5, %vm275_vm8 }
 0x646   :  { %v2190_v55 = vsel %vm283_vm9, 1.0, %v2996_v61 }
 0x647   :  { %v303_v57 = vpack.c.bf16 %v2190_v55, %v2189_v56 }
 0x651   :  { %2226 = vmatmul.msk.bf16.gmra.mxu0 %vm358_vm6, %v303_v57  ;;  %2230 = vmatmul.msk.bf16.gmra.mxu1 %vm358_vm6, %v303_v57 }
 0x69c   :  { %v868_v59 = vpop.permute.xlu2 %867 }
 0x69d   :  { %2285 = vmatmul.msk.bf16.vlgmr.msrb.gmra.mxu0 %vm358_vm6, %v868_v59  ;;  %2286 = vmatmul.msk.bf16.vlgmr.msrb.gmra.mxu1 %vm358_vm6, %v868_v59 }
 0x6be   :  { %v390_v60 = vpop.f32.mrf.mxu0  ;;  %v419_v62 = vpop.f32.mrf.mxu1 }
 0x6bf   :  { %v391_v24 = vadd.f32 %v390_v60, %v3329_v7  ;;  %v420_v8 = vadd.f32 %v419_v62, %v3332_v15 }
 0x6c6   :  { %v3450_v63 = vpop.f32.mrf.mxu0  ;;  %v3452_v5 = vpop.f32.mrf.mxu1 }
 0x6c7   :  { %v422_v60 = vadd.f32 %v3452_v5, %v3332_v15 }
 0x6ce   :  { %v3454_v0 = vpop.f32.mrf.mxu0  ;;  %v3456_v13 = vpop.f32.mrf.mxu1 }
 0x6d6   :  { %v3458_v17 = vpop.f32.mrf.mxu0  ;;  %v3460_v1 = vpop.f32.mrf.mxu1 }
 0x71a   :  { %v881_v25 = vpop.f32.mrf.mxu0  ;;  %v894_v39 = vpop.f32.mrf.mxu1 }
 0x71b   :  { %v898_v2 = vadd.f32 %v881_v25, %v391_v24  ;;  %v899_v10 = vadd.f32 %v894_v39, %v420_v8 }
 0x71d   :  { %v2287_v29 = vmul.f32 -1.442695, %v898_v2  ;;  %v2288_v27 = vmul.f32 -1.442695, %v899_v10 }
 0x71f   :  { %2568 = vpow2.f32 %v2287_v29 }
 0x722   :  { %v883_v3 = vpop.f32.mrf.mxu0  ;;  %v896_v48 = vpop.f32.mrf.mxu1 }
 0x725   :  { %v2569_v4 = vpop.eup %2568 }
 0x726   :  { %v906_v6 = vadd.f32 1.0, %v2569_v4 }
 0x728   :  { %2570 = vrcp.f32 %v906_v6  ;;  %v919_v14 = vand.u32 2147483648, %v906_v6  ;;  %v917_v18 = vand.u32 2147483647, %v906_v6  ;;  %vm913_vm13 = vweird.f32 %v906_v6 }
 0x729   :  { %2572 = vtanh.f32 %v899_v10 }
 0x72a   :  { %v920_v20 = vor.u32 1.1754944e-38, %v919_v14  ;;  %vm918_vm15 = vcmp.eq.f32.partialorder %v917_v18, 8.507059e+37  ;;  %2574 = vpow2.f32 %v2288_v27 }
 0x72e   :  { %v2571_v9 = vpop.eup %2570 }
 0x72f   :  { %v909_v11 = vmul.f32 %v2571_v9, %v906_v6  ;;  %vm914_vm12 = vweird.f32 %v2571_v9  ;;  %v2573_v22 = vpop.eup %2572 }
 0x730   :  { %vm915_vm14 = vmor %vm913_vm13, %vm914_vm12  ;;  %v2575_v28 = vpop.eup %2574 }
 0x731   :  { %v910_v12 = vsub.f32 1.0, %v909_v11  ;;  %v907_v30 = vadd.f32 1.0, %v2575_v28 }
 0x733   :  { %v911_v16 = vmul.f32 %v2571_v9, %v910_v12  ;;  %2576 = vrcp.f32 %v907_v30  ;;  %v934_v42 = vand.u32 2147483648, %v907_v30  ;;  %vm928_vm1 = vweird.f32 %v907_v30 }
 0x734   :  { %v932_v43 = vand.u32 2147483647, %v907_v30 }
 0x735   :  { %v912_v19 = vadd.f32 %v2571_v9, %v911_v16  ;;  %v935_v46 = vor.u32 1.1754944e-38, %v934_v42 }
 0x736   :  { %vm933_vm3 = vcmp.eq.f32.partialorder %v932_v43, 8.507059e+37 }
 0x737   :  { %v916_v21 = vsel %vm915_vm14, %v2571_v9, %v912_v19 }
 0x738   :  { %v921_v23 = vsel %vm918_vm15, %v920_v20, %v916_v21 }
 0x739   :  { %v940_v26 = vmul.f32 %v2573_v22, %v921_v23  ;;  %v2577_v31 = vpop.eup %2576  ;;  %v939_v36 = vmul.f32 %v921_v23, %v3428_v34  ;;  %v393_v34 = vadd.f32 %v3450_v63, %v3329_v7 }
 0x73a   :  { %v924_v32 = vmul.f32 %v2577_v31, %v907_v30  ;;  %vm929_vm0 = vweird.f32 %v2577_v31 }
 0x73b   :  { %942 = vrot.lane.b32.xlu0 %v940_v26, %s2987_s29  ;;  %vm930_vm2 = vmor %vm928_vm1, %vm929_vm0 }
 0x73c   :  { %v925_v33 = vsub.f32 1.0, %v924_v32 }
 0x73e   :  { %v926_v35 = vmul.f32 %v2577_v31, %v925_v33 }
 0x740   :  { %v927_v40 = vadd.f32 %v2577_v31, %v926_v35 }
 0x742   :  { %v931_v44 = vsel %vm930_vm2, %v2577_v31, %v927_v40 }
 0x743   :  { %v936_v49 = vsel %vm933_vm3, %v935_v46, %v931_v44 }
 0x7ad   :  { %v943_v37 = vpop.permute.xlu0 %942 }
 0x7ae   :  { %v945_v38 = vadd.f32 %v943_v37, %v939_v36  ;;  %v396_v36 = vadd.f32 %v3454_v0, %v3329_v7 }
 0x7b0   :  { %2578 = vtanh.f32 %v945_v38 }
 0x7b6   :  { %v2579_v47 = vpop.eup %2578 }
 0x7b7   :  { %v947_v50 = vmul.f32 %v2579_v47, %v936_v49  ;;  %v425_v49 = vadd.f32 %v3456_v13, %v3332_v15 }
 0x7b9   :  { %v948_v45 = vpack.c.bf16 %v947_v50, %v947_v50 }
 0x7bb   :  { %950 = vrot.lane.b32.xlu1 %v948_v45, %s2987_s29 }
 0x82d   :  { %v951_v51 = vpop.permute.xlu1 %950 }
 0x82e   :  { %2289 = vmatmul.msk.bf16.vlgmr.msra.gmra.mxu2 %vm358_vm6, %v951_v51  ;;  %2290 = vmatmul.msk.bf16.vlgmr.msra.gmra.mxu3 %vm358_vm6, %v951_v51 }
 0x8b1   :  { %v964_v52 = vpop.f32.mrf.mxu2  ;;  %v977_v53 = vpop.f32.mrf.mxu3 }
 0x8b2   :  { %v981_v54 = vadd.f32 %v964_v52, %v393_v34  ;;  %v982_v24 = vadd.f32 %v977_v53, %v422_v60 }
 0x8b4   :  { %v2291_v41 = vmul.f32 -1.442695, %v981_v54  ;;  %v2292_v5 = vmul.f32 -1.442695, %v982_v24 }
 0x8b6   :  { %2580 = vpow2.f32 %v2291_v41 }
 0x8b9   :  { %v966_v55 = vpop.f32.mrf.mxu2  ;;  %v979_v56 = vpop.f32.mrf.mxu3 }
 0x8bc   :  { %v2581_v57 = vpop.eup %2580 }
 0x8bd   :  { %v989_v59 = vadd.f32 1.0, %v2581_v57 }
 0x8bf   :  { %2582 = vrcp.f32 %v989_v59  ;;  %v1002_v2 = vand.u32 2147483648, %v989_v59  ;;  %v1000_v29 = vand.u32 2147483647, %v989_v59  ;;  %vm996_vm5 = vweird.f32 %v989_v59 }
 0x8c0   :  { %2584 = vtanh.f32 %v982_v24 }
 0x8c1   :  { %v1003_v48 = vor.u32 1.1754944e-38, %v1002_v2  ;;  %vm1001_vm8 = vcmp.eq.f32.partialorder %v1000_v29, 8.507059e+37  ;;  %2586 = vpow2.f32 %v2292_v5 }
 0x8c5   :  { %v2583_v62 = vpop.eup %2582 }
 0x8c6   :  { %v992_v25 = vmul.f32 %v2583_v62, %v989_v59  ;;  %vm997_vm4 = vweird.f32 %v2583_v62  ;;  %v2585_v6 = vpop.eup %2584 }
 0x8c7   :  { %vm998_vm7 = vmor %vm996_vm5, %vm997_vm4  ;;  %v2587_v10 = vpop.eup %2586 }
 0x8c8   :  { %v993_v39 = vsub.f32 1.0, %v992_v25  ;;  %v990_v11 = vadd.f32 1.0, %v2587_v10 }
 0x8ca   :  { %v994_v63 = vmul.f32 %v2583_v62, %v993_v39  ;;  %2588 = vrcp.f32 %v990_v11  ;;  %v1017_v23 = vand.u32 2147483648, %v990_v11  ;;  %vm1011_vm10 = vweird.f32 %v990_v11 }
 0x8cb   :  { %v1015_v26 = vand.u32 2147483647, %v990_v11 }
 0x8cc   :  { %v995_v3 = vadd.f32 %v2583_v62, %v994_v63  ;;  %v1018_v28 = vor.u32 1.1754944e-38, %v1017_v23 }
 0x8cd   :  { %vm1016_vm12 = vcmp.eq.f32.partialorder %v1015_v26, 8.507059e+37 }
 0x8ce   :  { %v999_v4 = vsel %vm998_vm7, %v2583_v62, %v995_v3 }
 0x8cf   :  { %v1004_v8 = vsel %vm1001_vm8, %v1003_v48, %v999_v4 }
 0x8d0   :  { %v1023_v9 = vmul.f32 %v2585_v6, %v1004_v8  ;;  %v2589_v12 = vpop.eup %2588  ;;  %v1022_v19 = vmul.f32 %v1004_v8, %v945_v38 }
 0x8d1   :  { %v1007_v14 = vmul.f32 %v2589_v12, %v990_v11  ;;  %vm1012_vm9 = vweird.f32 %v2589_v12 }
 0x8d2   :  { %1025 = vrot.lane.b32.xlu2 %v1023_v9, %s2987_s29  ;;  %vm1013_vm11 = vmor %vm1011_vm10, %vm1012_vm9 }
 0x8d3   :  { %v1008_v16 = vsub.f32 1.0, %v1007_v14  ;;  %v429_v14 = vld [vmem:[%s3783_s1] sm:$0xff] }
 0x8d5   :  { %v1009_v18 = vmul.f32 %v2589_v12, %v1008_v16 }
 0x8d7   :  { %v1010_v22 = vadd.f32 %v2589_v12, %v1009_v18  ;;  %v398_v18 = vadd.f32 %v3458_v17, %v3329_v7 }
 0x8d9   :  { %v1014_v27 = vsel %vm1013_vm11, %v2589_v12, %v1010_v22 }
 0x8da   :  { %v1019_v31 = vsel %vm1016_vm12, %v1018_v28, %v1014_v27 }
 0x92c   :  { %v1026_v20 = vpop.permute.xlu2 %1025 }
 0x92d   :  { %v1028_v21 = vadd.f32 %v1026_v20, %v1022_v19 }
 0x92f   :  { %2590 = vtanh.f32 %v1028_v21 }
 0x935   :  { %v2591_v30 = vpop.eup %2590 }
 0x936   :  { %v1030_v32 = vmul.f32 %v2591_v30, %v1019_v31  ;;  %v427_v30 = vadd.f32 %v3460_v1, %v3332_v15  ;;  %v430_v15 = vld [vmem:[%s3783_s1 + $0x8] sm:$0xff] }
 0x938   :  { %v1031_v33 = vpack.c.bf16 %v1030_v32, %v1030_v32 }
 0x93a   :  { %1033 = vrot.lane.b32.xlu0 %v1031_v33, %s2987_s29 }
 0x9ac   :  { %v1034_v35 = vpop.permute.xlu0 %1033 }
 0x9ad   :  { %2293 = vmatmul.msk.bf16.vlgmr.msra.gmra.mxu0 %vm358_vm6, %v1034_v35  ;;  %2294 = vmatmul.msk.bf16.vlgmr.msra.gmra.mxu1 %vm358_vm6, %v1034_v35 }
 0xa2a   :  { %v1047_v37 = vpop.f32.mrf.mxu0  ;;  %v1060_v38 = vpop.f32.mrf.mxu1 }
 0xa2b   :  { %v1064_v40 = vadd.f32 %v1047_v37, %v396_v36  ;;  %v1065_v45 = vadd.f32 %v1060_v38, %v425_v49  ;;  %v2470_v49 = vld [vmem:[%s3755_s9 + $0x18] sm:$0xff] }
 0xa2c   :  { %1293 = vmatpush.bf16.msrb.mxu1 %v2470_v49 }
 0xa2d   :  { %v2295_v42 = vmul.f32 -1.442695, %v1064_v40  ;;  %v2296_v13 = vmul.f32 -1.442695, %v1065_v45 }
 0xa2f   :  { %2592 = vpow2.f32 %v2295_v42 }
 0xa32   :  { %v1049_v43 = vpop.f32.mrf.mxu0  ;;  %v1062_v44 = vpop.f32.mrf.mxu1 }
 0xa35   :  { %v2593_v46 = vpop.eup %2592 }
 0xa36   :  { %v1072_v47 = vadd.f32 1.0, %v2593_v46 }
 0xa38   :  { %2594 = vrcp.f32 %v1072_v47  ;;  %v1085_v52 = vand.u32 2147483648, %v1072_v47  ;;  %v1083_v53 = vand.u32 2147483647, %v1072_v47  ;;  %vm1079_vm14 = vweird.f32 %v1072_v47 }
 0xa39   :  { %2596 = vtanh.f32 %v1065_v45  ;;  %v2469_v45 = vld [vmem:[%s3755_s9 + $0x10] sm:$0xff] }
 0xa3a   :  { %v1086_v41 = vor.u32 1.1754944e-38, %v1085_v52  ;;  %vm1084_vm0 = vcmp.eq.f32.partialorder %v1083_v53, 8.507059e+37  ;;  %2598 = vpow2.f32 %v2296_v13  ;;  %1294 = vmatpush.bf16.msrb.mxu1 %v2469_v45  ;;  %v2468_v52 = vld [vmem:[%s3755_s9 + $0x8] sm:$0xff] }
 0xa3e   :  { %v2595_v50 = vpop.eup %2594  ;;  %1295 = vmatpush.bf16.msrb.mxu1 %v2468_v52 }
 0xa3f   :  { %v1075_v51 = vmul.f32 %v2595_v50, %v1072_v47  ;;  %vm1080_vm13 = vweird.f32 %v2595_v50  ;;  %v2597_v56 = vpop.eup %2596 }
 0xa40   :  { %vm1081_vm15 = vmor %vm1079_vm14, %vm1080_vm13  ;;  %v2599_v60 = vpop.eup %2598 }
 0xa41   :  { %v1076_v34 = vsub.f32 1.0, %v1075_v51  ;;  %v1073_v62 = vadd.f32 1.0, %v2599_v60  ;;  %v2465_v51 = vld [vmem:[%s3753_s7 + $0x10] sm:$0xff] }
 0xa43   :  { %v1077_v0 = vmul.f32 %v2595_v50, %v1076_v34  ;;  %2600 = vrcp.f32 %v1073_v62  ;;  %v1100_v4 = vand.u32 2147483648, %v1073_v62  ;;  %vm1094_vm2 = vweird.f32 %v1073_v62 }
 0xa44   :  { %v1098_v6 = vand.u32 2147483647, %v1073_v62 }
 0xa45   :  { %v1078_v54 = vadd.f32 %v2595_v50, %v1077_v0  ;;  %v1101_v9 = vor.u32 1.1754944e-38, %v1100_v4  ;;  %v2464_v0 = vld [vmem:[%s3753_s7 + $0x8] sm:$0xff]  ;;  %v2488_v4 = vld [vmem:[#allocation12 + $0x8] sm:$0xff] }
 0xa46   :  { %vm1099_vm4 = vcmp.eq.f32.partialorder %v1098_v6, 8.507059e+37  ;;  %v2478_v6 = vld [vmem:[%s3757_s11 + $0x38] sm:$0xff] }
 0xa47   :  { %v1082_v55 = vsel %vm1081_vm15, %v2595_v50, %v1078_v54  ;;  %v2466_v50 = vld [vmem:[%s3753_s7 + $0x18] sm:$0xff]  ;;  %v2467_v54 = vld [vmem:[%s3755_s9] sm:$0xff]  ;;  %1379 = vmatpush.bf16.msra.mxu3 %v2478_v6  ;;  %s2149_s9 = sshll.u32 %s3766_s20, 4  ;;  %s3000_s20 = smov [#allocation18]   ;;  %s2150_s9 = int_to_ptr.hbm [resolvable:$true] %s2149_s9 }
 0xa48   :  { %v1087_v57 = vsel %vm1084_vm0, %v1086_v41, %v1082_v55  ;;  %1244 = vmatpush.bf16.msrb.mxu0 %v2466_v50  ;;  %v2463_v41 = vld [vmem:[%s3753_s7] sm:$0xff]  ;;  %1296 = vmatpush.bf16.msrb.mxu1 %v2467_v54  ;;  %vm1489_vm0 = vcmask 261120   ;;  %s2133_s26 = sshll.u32 %s3000_s20, 4  ;;  %s2134_s26 = int_to_ptr.vmem [resolvable:$true] %s2133_s26 }
 0xa49   :  { %v1106_v59 = vmul.f32 %v2597_v56, %v1087_v57  ;;  %v2601_v24 = vpop.eup %2600  ;;  %v1105_v63 = vmul.f32 %v1087_v57, %v1028_v21 }
 0xa4a   :  { %v1090_v25 = vmul.f32 %v2601_v24, %v1073_v62  ;;  %vm1095_vm1 = vweird.f32 %v2601_v24 }
 0xa4b   :  { %1108 = vrot.lane.b32.xlu1 %v1106_v59, %s2987_s29  ;;  %vm1096_vm3 = vmor %vm1094_vm2, %vm1095_vm1 }
 0xa4c   :  { %v1091_v39 = vsub.f32 1.0, %v1090_v25  ;;  %1245 = vmatpush.bf16.msrb.mxu0 %v2465_v51  ;;  %v2517_v51 = vld [vmem:[#allocation11] ss:$0 sm:$0xff] }
 0xa4e   :  { %v1092_v2 = vmul.f32 %v2601_v24, %v1091_v39 }
 0xa50   :  { %v1093_v48 = vadd.f32 %v2601_v24, %v1092_v2  ;;  %1246 = vmatpush.bf16.msrb.mxu0 %v2464_v0 }
 0xa52   :  { %v1097_v8 = vsel %vm1096_vm3, %v2601_v24, %v1093_v48 }
 0xa53   :  { %v1102_v10 = vsel %vm1099_vm4, %v1101_v9, %v1097_v8  ;;  %v2477_v8 = vld [vmem:[%s3757_s11 + $0x30] sm:$0xff]  ;;  %v2476_v9 = vld [vmem:[%s3757_s11 + $0x28] sm:$0xff] }
 0xa54   :  { %1247 = vmatpush.bf16.msrb.mxu0 %v2463_v41  ;;  %1380 = vmatpush.bf16.msra.mxu3 %v2477_v8 }
 0xa58   :  { %1508 = vmatpush.bf16.msra.mxu0 %v2488_v4  ;;  %1381 = vmatpush.bf16.msra.mxu3 %v2476_v9 }
 0xabd   :  { %v1109_v29 = vpop.permute.xlu1 %1108 }
 0xabe   :  { %v3482_v3 = vadd.f32 %v1109_v29, %v1105_v63 }
 0xac0   :  { %2602 = vtanh.f32 %v3482_v3 }
 0xac6   :  { %v2603_v5 = vpop.eup %2602 }
 0xac7   :  { %v1113_v11 = vmul.f32 %v2603_v5, %v1102_v10  ;;  %v2475_v5 = vld [vmem:[%s3757_s11 + $0x20] sm:$0xff]  ;;  %v2474_v10 = vld [vmem:[%s3757_s11 + $0x18] sm:$0xff] }
 0xac8   :  { %1382 = vmatpush.bf16.msra.mxu3 %v2475_v5 }
 0xac9   :  { %v1114_v12 = vpack.c.bf16 %v1113_v11, %v1113_v11 }
 0xacb   :  { %1116 = vrot.lane.b32.xlu2 %v1114_v12, %s2987_s29  ;;  %v2473_v12 = vld [vmem:[%s3757_s11 + $0x10] sm:$0xff] }
 0xacc   :  { %1383 = vmatpush.bf16.msra.mxu3 %v2474_v10 }
 0xad0   :  { %1384 = vmatpush.bf16.msra.mxu3 %v2473_v12 }
 0xad3   :  { %438 = vperm.xlu2 %2514, %v429_v14  }
 0xb25   :  { %v1117_v16 = vpop.permute.xlu2 %1116 }
 0xb26   :  { %2297 = vmatmul.msk.bf16.vlgmr.msrb.gmra.mxu2 %vm358_vm6, %v1117_v16  ;;  %2298 = vmatmul.msk.bf16.vlgmr.msrb.gmra.mxu3 %vm358_vm6, %v1117_v16 }
 0xb2d   :  { %v439_v16 = vpop.permute.xlu2 %438 }
 0xb2e   :  { %vm461_vm15 = vcmp.eq.s32.totalorder %v3310_v58, %v439_v16 }
 0xba9   :  { %v1130_v19 = vpop.f32.mrf.mxu2  ;;  %v1143_v20 = vpop.f32.mrf.mxu3 }
 0xbaa   :  { %v1147_v21 = vadd.f32 %v1130_v19, %v398_v18  ;;  %v1148_v32 = vadd.f32 %v1143_v20, %v427_v30  ;;  %v2231_v19 = vsel %vm461_vm15, 1.0, %v2996_v61  ;;  %v2482_v30 = vld [vmem:[%s3760_s14 + $0x18] sm:$0xff] }
 0xbac   :  { %v2299_v22 = vmul.f32 -1.442695, %v1147_v21  ;;  %v2300_v1 = vmul.f32 -1.442695, %v1148_v32  ;;  %v2472_v21 = vld [vmem:[%s3757_s11 + $0x8] sm:$0xff] }
 0xbad   :  { %1385 = vmatpush.bf16.msra.mxu3 %v2472_v21 }
 0xbae   :  { %2604 = vpow2.f32 %v2299_v22  ;;  %v2471_v22 = vld [vmem:[%s3757_s11] sm:$0xff] }
 0xbb1   :  { %v1132_v23 = vpop.f32.mrf.mxu2  ;;  %v1145_v26 = vpop.f32.mrf.mxu3  ;;  %1386 = vmatpush.bf16.msra.mxu3 %v2471_v22 }
 0xbb2   :  { %v2486_v23 = vld [vmem:[%s3760_s14 + $0x38] sm:$0xff]  ;;  %v2485_v26 = vld [vmem:[%s3760_s14 + $0x30] sm:$0xff] }
 0xbb4   :  { %v2605_v27 = vpop.eup %2604 }
 0xbb5   :  { %v1155_v28 = vadd.f32 1.0, %v2605_v27  ;;  %1460 = vmatpush.bf16.msrb.mxu3 %v2486_v23  ;;  %v2484_v27 = vld [vmem:[%s3760_s14 + $0x28] sm:$0xff] }
 0xbb7   :  { %2606 = vrcp.f32 %v1155_v28  ;;  %v1168_v36 = vand.u32 2147483648, %v1155_v28  ;;  %v1166_v17 = vand.u32 2147483647, %v1155_v28  ;;  %vm1162_vm7 = vweird.f32 %v1155_v28 }
 0xbb8   :  { %2608 = vtanh.f32 %v1148_v32  ;;  %v2480_v32 = vld [vmem:[%s3760_s14 + $0x8] sm:$0xff] }
 0xbb9   :  { %v1169_v38 = vor.u32 1.1754944e-38, %v1168_v36  ;;  %vm1167_vm9 = vcmp.eq.f32.partialorder %v1166_v17, 8.507059e+37  ;;  %2610 = vpow2.f32 %v2300_v1  ;;  %1461 = vmatpush.bf16.msrb.mxu3 %v2485_v26  ;;  %v2479_v36 = vld [vmem:[%s3760_s14] sm:$0xff] }
 0xbbd   :  { %v2607_v31 = vpop.eup %2606  ;;  %1462 = vmatpush.bf16.msrb.mxu3 %v2484_v27 }
 0xbbe   :  { %v1158_v33 = vmul.f32 %v2607_v31, %v1155_v28  ;;  %vm1163_vm5 = vweird.f32 %v2607_v31  ;;  %v2609_v42 = vpop.eup %2608  ;;  %v2483_v28 = vld [vmem:[%s3760_s14 + $0x20] sm:$0xff] }
 0xbbf   :  { %vm1164_vm8 = vmor %vm1162_vm7, %vm1163_vm5  ;;  %v2611_v46 = vpop.eup %2610 }
 0xbc0   :  { %v1159_v35 = vsub.f32 1.0, %v1158_v33  ;;  %v1156_v47 = vadd.f32 1.0, %v2611_v46  ;;  %v2515_v33 = vld [vmem:[#allocation8] ss:$0 sm:$0xff]  ;;  %v1304_v46 = vld [vmem:[#allocation3] sm:$0xff] }
 0xbc1   :  { %1463 = vmatpush.bf16.msrb.mxu3 %v2483_v28 }
 0xbc2   :  { %v1160_v7 = vmul.f32 %v2607_v31, %v1159_v35  ;;  %2612 = vrcp.f32 %v1156_v47  ;;  %v1183_v62 = vand.u32 2147483648, %v1156_v47  ;;  %vm1177_vm11 = vweird.f32 %v1156_v47  ;;  %v2516_v35 = vld [vmem:[#allocation9] ss:$0 sm:$0xff] }
 0xbc3   :  { %v1181_v24 = vand.u32 2147483647, %v1156_v47 }
 0xbc4   :  { %v1161_v37 = vadd.f32 %v2607_v31, %v1160_v7  ;;  %v1184_v39 = vor.u32 1.1754944e-38, %v1183_v62 }
 0xbc5   :  { %vm1182_vm13 = vcmp.eq.f32.partialorder %v1181_v24, 8.507059e+37  ;;  %1464 = vmatpush.bf16.msrb.mxu3 %v2482_v30 }
 0xbc6   :  { %v1165_v40 = vsel %vm1164_vm8, %v2607_v31, %v1161_v37  ;;  %v2481_v31 = vld [vmem:[%s3760_s14 + $0x10] sm:$0xff]  ;;  %s2997_s14 = smov 32  }
 0xbc7   :  { %v1170_v43 = vsel %vm1167_vm9, %v1169_v38, %v1165_v40 }
 0xbc8   :  { %v1189_v44 = vmul.f32 %v2609_v42, %v1170_v43  ;;  %v2613_v34 = vpop.eup %2612  ;;  %v1188_v57 = vmul.f32 %v1170_v43, %v3482_v3  ;;  %v2487_v3 = vld [vmem:[#allocation12] sm:$0xff]  ;;  %v3583_v42 = vld [vmem:[%s3762_s16 + $0x8] sm:$0xff] }
 0xbc9   :  { %v1173_v53 = vmul.f32 %v2613_v34, %v1156_v47  ;;  %vm1178_vm10 = vweird.f32 %v2613_v34  ;;  %1509 = vmatpush.bf16.msra.mxu0 %v2487_v3  ;;  %1465 = vmatpush.bf16.msrb.mxu3 %v2481_v31 }
 0xbca   :  { %1191 = vrot.lane.b32.xlu0 %v1189_v44, %s2987_s29  ;;  %vm1179_vm12 = vmor %vm1177_vm11, %vm1178_vm10  ;;  %1557 = vmatpush.bf16.msra.mxu1 %v3583_v42  ;;  %v3589_v44 = vld [vmem:[%s3762_s16] sm:$0xff] }
 0xbcb   :  { %v1174_v55 = vsub.f32 1.0, %v1173_v53  ;;  %1683 = vmatpush.bf16.msra.mxu2 %v3583_v42 }
 0xbcd   :  { %v1175_v56 = vmul.f32 %v2613_v34, %v1174_v55  ;;  %1466 = vmatpush.bf16.msrb.mxu3 %v2480_v32  ;;  %v2518_v55 = vld [vmem:[#allocation14] ss:$0 sm:$0xff] }
 0xbce   :  { %1558 = vmatpush.bf16.msra.mxu1 %v3589_v44 }
 0xbcf   :  { %v1176_v60 = vadd.f32 %v2613_v34, %v1175_v56  ;;  %1684 = vmatpush.bf16.msra.mxu2 %v3589_v44 }
 0xbd1   :  { %v1180_v25 = vsel %vm1179_vm12, %v2613_v34, %v1176_v60  ;;  %1467 = vmatpush.bf16.msrb.mxu3 %v2479_v36 }
 0xbd2   :  { %441 = vperm.xlu0 %2512, %v430_v15   ;;  %v1185_v63 = vsel %vm1182_vm13, %v1184_v39, %v1180_v25 }
 0xbd3   :  { %1872 = vmatpush.bf16.msrb.mxu2 %v3583_v42 }
 0xbd7   :  { %1873 = vmatpush.bf16.msrb.mxu2 %v3589_v44 }
 0xc3c   :  { %v1192_v59 = vpop.permute.xlu0 %1191 }
 0xc3d   :  { %v1194_v13 = vadd.f32 %v1192_v59, %v1188_v57 }
 0xc3f   :  { %2614 = vtanh.f32 %v1194_v13 }
 0xc44   :  { %v442_v14 = vpop.permute.xlu0 %441 }
 0xc45   :  { %v2615_v2 = vpop.eup %2614  ;;  %vm462_vm14 = vcmp.eq.s32.totalorder %v3310_v58, %v442_v14 }
 0xc46   :  { %v1196_v29 = vmul.f32 %v2615_v2, %v1185_v63  ;;  %v2232_v18 = vsel %vm462_vm14, 1.0, %v2996_v61 }
 0xc47   :  { %v485_v20 = vpack.c.bf16 %v2232_v18, %v2231_v19 }
 0xc48   :  { %v1197_v48 = vpack.c.bf16 %v1196_v29, %v1196_v29 }
 0xc4a   :  { %1211 = vrot.lane.b32.xlu1 %v1197_v48, %s2987_s29 }
 0xcbc   :  { %v1212_v11 = vpop.permute.xlu1 %1211 }
 0xcbd   :  { %2317 = vmatmul.msk.bf16.vlgmr.msrb.gmra.mxu0 %vm358_vm6, %v1212_v11  ;;  %2334 = vmatmul.msk.bf16.vlgmr.msrb.gmra.mxu1 %vm358_vm6, %v1212_v11 }
 0xcbe   :  { %1620 = vmatpush.bf16.msrb.mxu1 %v3583_v42 }
 0xcc2   :  { %1621 = vmatpush.bf16.msrb.mxu1 %v3589_v44 }
 0xccd   :  { %2407 = vmatmul.msk.bf16.vlgmr.msra.gmra.mxu0 %vm1489_vm0, %v485_v20 }
 0xd3a   :  { %v1249_v7 = vpop.f32.mrf.mxu0  ;;  %v1298_v17 = vpop.f32.mrf.mxu1 }
 0xd3b   :  { %v1250_v37 = vadd.f32 %v2515_v33, %v1249_v7  ;;  %v1299_v38 = vadd.f32 %v2516_v35, %v1298_v17  ;;  %v431_v33 = vld [vmem:[%s3783_s1 + $0x10] sm:$0xff] }
 0xd3d   :  { %1302 = vst [vmem:[#allocation19] sm:$0xff] %v1250_v37  ;;  %v1305_v40 = vmul.f32 0.5, %v1299_v38 }
 0xd3e   :  { %1303 = vst [vmem:[#allocation21] sm:$0xff] %v1299_v38 }
 0xd3f   :  { %v1306_v43 = vmul.f32 1.442695, %v1305_v40 }
 0xd41   :  { %2616 = vpow2.f32 %v1306_v43 }
 0xd42   :  { %v1251_v15 = vpop.f32.mrf.mxu0  ;;  %v1300_v1 = vpop.f32.mrf.mxu1 }
 0xd47   :  { %v2617_v47 = vpop.eup %2616 }
 0xd48   :  { %v1308_v49 = vmul.f32 %v2617_v47, %v1304_v46 }
 0xd4a   :  { %v1309_v50 = vadd.f32 %v1308_v49, %v1250_v37  ;;  %v1511_v57 = vpop.f32.mrf.mxu0 }
 0xd4c   :  { %v1310_v45 = vpack.c.bf16 %v1309_v50, %v1309_v50  ;;  %v432_v50 = vld [vmem:[%s3783_s1 + $0x18] sm:$0xff] }
 0xd4e   :  { %1387 = vmatmul.bf16.vlgmr.msra.gmra.mxu3 %v1310_v45 }
 0xd4f   :  { %1746 = vmatpush.bf16.msra.mxu3 %v3583_v42 }
 0xd52   :  { %v1513_v26 = vpop.f32.mrf.mxu0 }
 0xd53   :  { %1747 = vmatpush.bf16.msra.mxu3 %v3589_v44 }
 0xd5e   :  { %1468 = vmatmul.bf16.vlgmr.msrb.gmra.mxu3 %v1310_v45 }
 0xd5f   :  { %1935 = vmatpush.bf16.msrb.mxu3 %v3583_v42 }
 0xd63   :  { %1936 = vmatpush.bf16.msrb.mxu3 %v3589_v44 }
 0xdd1   :  { %v1388_v34 = vpop.f32.mrf.mxu3 }
 0xdd2   :  { %v1389_v52 = vadd.f32 %v2517_v51, %v1388_v34 }
 0xdd4   :  { %v1535_v0 = vpack.c.bf16 %v1389_v52, %v1389_v52 }
 0xdd6   :  { %2419 = vmatmul.msk.bf16.vlgmr.msra.gmra.mxu1 %vm1489_vm0, %v1535_v0 }
 0xdd7   :  { %1809 = vmatpush.bf16.msra.mxu1 %v3583_v42 }
 0xdd9   :  { %v1390_v53 = vpop.f32.mrf.mxu3 }
 0xddb   :  { %1810 = vmatpush.bf16.msra.mxu1 %v3589_v44 }
 0xde1   :  { %v1469_v54 = vpop.f32.mrf.mxu3 }
 0xde2   :  { %v3605_v56 = vadd.f32 %v2518_v55, %v1469_v54 }
 0xde4   :  { %v1512_v59 = vadd.f32 %v1511_v57, %v3605_v56  ;;  %v1514_v27 = vadd.f32 %v1513_v26, %v3605_v56 }
 0xde9   :  { %v1471_v41 = vpop.f32.mrf.mxu3 }
 0xe53   :  { %v1560_v13 = vpop.f32.mrf.mxu1 }
 0xe54   :  { %v1564_v60 = vadd.f32 %v1560_v13, %v1512_v59 }
 0xe56   :  { %2618 = vtanh.f32 %v1564_v60  ;;  %v2420_v25 = vmul.f32 -1.442695, %v1564_v60 }
 0xe58   :  { %2620 = vpow2.f32 %v2420_v25 }
 0xe5b   :  { %v1562_v62 = vpop.f32.mrf.mxu1 }
 0xe5c   :  { %v2619_v24 = vpop.eup %2618 }
 0xe5d   :  { %1587 = vrot.lane.b32.xlu1 %v2619_v24, %s2987_s29 }
 0xe5e   :  { %v2621_v39 = vpop.eup %2620 }
 0xe5f   :  { %v1568_v2 = vadd.f32 1.0, %v2621_v39 }
 0xe61   :  { %2622 = vrcp.f32 %v1568_v2  ;;  %v1580_v6 = vand.u32 2147483648, %v1568_v2  ;;  %vm1574_vm1 = vweird.f32 %v1568_v2  ;;  %v1578_v8 = vand.u32 2147483647, %v1568_v2 }
 0xe63   :  { %v1581_v5 = vor.u32 1.1754944e-38, %v1580_v6  ;;  %vm1579_vm3 = vcmp.eq.f32.partialorder %v1578_v8, 8.507059e+37 }
 0xe67   :  { %v2623_v63 = vpop.eup %2622 }
 0xe68   :  { %v1570_v29 = vmul.f32 %v2623_v63, %v1568_v2  ;;  %vm1575_vm6 = vweird.f32 %v2623_v63 }
 0xe69   :  { %vm1576_vm2 = vmor %vm1574_vm1, %vm1575_vm6 }
 0xe6a   :  { %v1571_v48 = vsub.f32 1.0, %v1570_v29 }
 0xe6c   :  { %v1572_v4 = vmul.f32 %v2623_v63, %v1571_v48 }
 0xe6e   :  { %v1573_v3 = vadd.f32 %v2623_v63, %v1572_v4 }
 0xe70   :  { %v1577_v9 = vsel %vm1576_vm2, %v2623_v63, %v1573_v3 }
 0xe71   :  { %v1582_v11 = vsel %vm1579_vm3, %v1581_v5, %v1577_v9 }
 0xe72   :  { %v1585_v14 = vmul.f32 0.0, %v1582_v11 }
 0xecf   :  { %v1588_v10 = vpop.permute.xlu1 %1587 }
 0xed0   :  { %v1590_v12 = vmul.f32 %v1588_v10, %v1582_v11 }
 0xed2   :  { %1592 = vrot.lane.b32.xlu2 %v1590_v12, %s2997_s14 }
 0xf2c   :  { %v1593_v16 = vpop.permute.xlu2 %1592 }
 0xf2d   :  { %v1595_v18 = vadd.f32 %v1593_v16, %v1585_v14 }
 0xf2f   :  { %2624 = vtanh.f32 %v1595_v18 }
 0xf35   :  { %v2625_v19 = vpop.eup %2624 }
 0xf36   :  { %1598 = vrot.lane.b32.xlu0 %v2625_v19, %s2987_s29 }
 0xfa8   :  { %v1599_v20 = vpop.permute.xlu0 %1598 }
 0xfa9   :  { %v3611_v21 = vmul.f32 %v1599_v20, %v1582_v11 }
 0xfab   :  { %v1607_v22 = vpack.c.bf16 %v3611_v21, %v3611_v21 }
 0xfad   :  { %1609 = vrot.lane.b32.xlu1 %v1607_v22, %s2997_s14 }
0x101f   :  { %v1610_v23 = vpop.permute.xlu1 %1609 }
0x1020   :  { %2421 = vmatmul.msk.bf16.vlgmr.msrb.gmra.mxu1 %vm1489_vm0, %v1610_v23 }
0x1021   :  { %1998 = vmatpush.bf16.msrb.mxu1 %v3583_v42 }
0x1025   :  { %1999 = vmatpush.bf16.msrb.mxu1 %v3589_v44 }
0x109d   :  { %v1623_v28 = vpop.f32.mrf.mxu1 }
0x109e   :  { %v1627_v30 = vadd.f32 %v1623_v28, %v1514_v27 }
0x10a0   :  { %2626 = vtanh.f32 %v1627_v30  ;;  %v2422_v35 = vmul.f32 -1.442695, %v1627_v30 }
0x10a2   :  { %2628 = vpow2.f32 %v2422_v35 }
0x10a5   :  { %v1625_v31 = vpop.f32.mrf.mxu1 }
0x10a6   :  { %v2627_v32 = vpop.eup %2626 }
0x10a7   :  { %1650 = vrot.lane.b32.xlu2 %v2627_v32, %s2987_s29 }
0x10a8   :  { %v2629_v36 = vpop.eup %2628 }
0x10a9   :  { %v1631_v7 = vadd.f32 1.0, %v2629_v36 }
0x10ab   :  { %2630 = vrcp.f32 %v1631_v7  ;;  %v1643_v43 = vand.u32 2147483648, %v1631_v7  ;;  %vm1637_vm5 = vweird.f32 %v1631_v7  ;;  %v1641_v44 = vand.u32 2147483647, %v1631_v7 }
0x10ad   :  { %v1644_v1 = vor.u32 1.1754944e-38, %v1643_v43  ;;  %vm1642_vm8 = vcmp.eq.f32.partialorder %v1641_v44, 8.507059e+37 }
0x10af   :  { %444 = vperm.xlu2 %2514, %v431_v33  }
0x10b1   :  { %v2631_v17 = vpop.eup %2630 }
0x10b2   :  { %v1633_v37 = vmul.f32 %v2631_v17, %v1631_v7  ;;  %vm1638_vm4 = vweird.f32 %v2631_v17 }
0x10b3   :  { %vm1639_vm7 = vmor %vm1637_vm5, %vm1638_vm4 }
0x10b4   :  { %v1634_v38 = vsub.f32 1.0, %v1633_v37  ;;  %v433_v37 = vld [vmem:[%s3783_s1 + $0x20] sm:$0xff] }
0x10b6   :  { %v1635_v40 = vmul.f32 %v2631_v17, %v1634_v38 }
0x10b8   :  { %v1636_v42 = vadd.f32 %v2631_v17, %v1635_v40 }
0x10ba   :  { %v1640_v15 = vsel %vm1639_vm7, %v2631_v17, %v1636_v42 }
0x10bb   :  { %v1645_v47 = vsel %vm1642_vm8, %v1644_v1, %v1640_v15 }
0x10bc   :  { %v1648_v45 = vmul.f32 %v1645_v47, %v1595_v18 }
0x1101   :  { %v1651_v46 = vpop.permute.xlu2 %1650 }
0x1102   :  { %v1653_v49 = vmul.f32 %v1651_v46, %v1645_v47 }
0x1104   :  { %1655 = vrot.lane.b32.xlu0 %v1653_v49, %s2997_s14 }
0x1109   :  { %v445_v52 = vpop.permute.xlu2 %444 }
0x110a   :  { %vm463_vm9 = vcmp.eq.s32.totalorder %v3310_v58, %v445_v52 }
0x110b   :  { %v2233_v54 = vsel %vm463_vm9, 1.0, %v2996_v61 }
0x110c   :  { %447 = vperm.xlu0 %2512, %v432_v50  }
0x1176   :  { %v1656_v51 = vpop.permute.xlu0 %1655 }
0x1177   :  { %v1658_v34 = vadd.f32 %v1656_v51, %v1648_v45 }
0x1179   :  { %2632 = vtanh.f32 %v1658_v34 }
0x117e   :  { %v448_v0 = vpop.permute.xlu0 %447 }
0x117f   :  { %v2633_v53 = vpop.eup %2632  ;;  %vm464_vm10 = vcmp.eq.s32.totalorder %v3310_v58, %v448_v0  ;;  %v434_v0 = vld [vmem:[%s3783_s1 + $0x28] sm:$0xff] }
0x1180   :  { %v2234_v41 = vsel %vm464_vm10, 1.0, %v2996_v61  ;;  %1661 = vrot.lane.b32.xlu1 %v2633_v53, %s2987_s29 }
0x1181   :  { %v486_v55 = vpack.c.bf16 %v2234_v41, %v2233_v54 }
0x1183   :  { %2408 = vmatmul.msk.bf16.gmra.mxu0 %vm1489_vm0, %v486_v55 }
0x11f2   :  { %v1662_v57 = vpop.permute.xlu1 %1661 }
0x11f3   :  { %v3634_v59 = vmul.f32 %v1662_v57, %v1645_v47 }
0x11f5   :  { %v1670_v13 = vpack.c.bf16 %v3634_v59, %v3634_v59 }
0x11f7   :  { %1672 = vrot.lane.b32.xlu1 %v1670_v13, %s2997_s14 }
0x1200   :  { %v1516_v62 = vpop.f32.mrf.mxu0 }
0x1201   :  { %v1517_v24 = vadd.f32 %v1516_v62, %v3605_v56 }
0x1208   :  { %v1518_v32 = vpop.f32.mrf.mxu0 }
0x1209   :  { %v1519_v33 = vadd.f32 %v1518_v32, %v3605_v56 }
0x1269   :  { %v1673_v60 = vpop.permute.xlu1 %1672 }
0x126a   :  { %2423 = vmatmul.msk.bf16.vlgmr.msra.gmra.mxu2 %vm1489_vm0, %v1673_v60 }
0x12ed   :  { %v1686_v25 = vpop.f32.mrf.mxu2 }
0x12ee   :  { %v1690_v39 = vadd.f32 %v1686_v25, %v1517_v24 }
0x12f0   :  { %2634 = vtanh.f32 %v1690_v39  ;;  %v2424_v29 = vmul.f32 -1.442695, %v1690_v39 }
0x12f2   :  { %2636 = vpow2.f32 %v2424_v29 }
0x12f5   :  { %v1688_v2 = vpop.f32.mrf.mxu2 }
0x12f6   :  { %v2635_v63 = vpop.eup %2634 }
0x12f7   :  { %1713 = vrot.lane.b32.xlu2 %v2635_v63, %s2987_s29 }
0x12f8   :  { %v2637_v48 = vpop.eup %2636 }
0x12f9   :  { %v1694_v4 = vadd.f32 1.0, %v2637_v48 }
0x12fb   :  { %2638 = vrcp.f32 %v1694_v4  ;;  %v1706_v10 = vand.u32 2147483648, %v1694_v4  ;;  %vm1700_vm12 = vweird.f32 %v1694_v4  ;;  %v1704_v11 = vand.u32 2147483647, %v1694_v4 }
0x12fd   :  { %v1707_v14 = vor.u32 1.1754944e-38, %v1706_v10  ;;  %vm1705_vm14 = vcmp.eq.f32.partialorder %v1704_v11, 8.507059e+37 }
0x1301   :  { %v2639_v3 = vpop.eup %2638 }
0x1302   :  { %v1696_v6 = vmul.f32 %v2639_v3, %v1694_v4  ;;  %vm1701_vm11 = vweird.f32 %v2639_v3 }
0x1303   :  { %vm1702_vm13 = vmor %vm1700_vm12, %vm1701_vm11 }
0x1304   :  { %v1697_v8 = vsub.f32 1.0, %v1696_v6 }
0x1306   :  { %v1698_v9 = vmul.f32 %v2639_v3, %v1697_v8 }
0x1308   :  { %v1699_v5 = vadd.f32 %v2639_v3, %v1698_v9 }
0x130a   :  { %v1703_v12 = vsel %vm1702_vm13, %v2639_v3, %v1699_v5 }
0x130b   :  { %v1708_v18 = vsel %vm1705_vm14, %v1707_v14, %v1703_v12 }
0x130c   :  { %v1711_v20 = vmul.f32 %v1708_v18, %v1658_v34 }
0x1351   :  { %v1714_v16 = vpop.permute.xlu2 %1713 }
0x1352   :  { %v1716_v19 = vmul.f32 %v1714_v16, %v1708_v18 }
0x1354   :  { %1718 = vrot.lane.b32.xlu0 %v1716_v19, %s2997_s14 }
0x13c6   :  { %v1719_v22 = vpop.permute.xlu0 %1718 }
0x13c7   :  { %v1721_v23 = vadd.f32 %v1719_v22, %v1711_v20 }
0x13c9   :  { %2640 = vtanh.f32 %v1721_v23 }
0x13cf   :  { %v2641_v26 = vpop.eup %2640 }
0x13d0   :  { %1724 = vrot.lane.b32.xlu1 %v2641_v26, %s2987_s29 }
0x1442   :  { %v1725_v27 = vpop.permute.xlu1 %1724 }
0x1443   :  { %v3644_v28 = vmul.f32 %v1725_v27, %v1708_v18 }
0x1445   :  { %v1733_v30 = vpack.c.bf16 %v3644_v28, %v3644_v28 }
0x1447   :  { %1735 = vrot.lane.b32.xlu2 %v1733_v30, %s2997_s14 }
0x14a1   :  { %v1736_v31 = vpop.permute.xlu2 %1735 }
0x14a2   :  { %2425 = vmatmul.msk.bf16.vlgmr.msra.gmra.mxu3 %vm1489_vm0, %v1736_v31 }
0x1525   :  { %v1749_v35 = vpop.f32.mrf.mxu3 }
0x1526   :  { %v1753_v36 = vadd.f32 %v1749_v35, %v1519_v33 }
0x1528   :  { %2642 = vtanh.f32 %v1753_v36  ;;  %v2426_v38 = vmul.f32 -1.442695, %v1753_v36 }
0x152a   :  { %2644 = vpow2.f32 %v2426_v38 }
0x152d   :  { %v1751_v7 = vpop.f32.mrf.mxu3 }
0x152e   :  { %v2643_v17 = vpop.eup %2642 }
0x152f   :  { %1776 = vrot.lane.b32.xlu0 %v2643_v17, %s2987_s29 }
0x1530   :  { %v2645_v40 = vpop.eup %2644 }
0x1531   :  { %v1757_v42 = vadd.f32 1.0, %v2645_v40 }
0x1533   :  { %2646 = vrcp.f32 %v1757_v42  ;;  %v1769_v47 = vand.u32 2147483648, %v1757_v42  ;;  %vm1763_vm6 = vweird.f32 %v1757_v42  ;;  %v1767_v49 = vand.u32 2147483647, %v1757_v42 }
0x1535   :  { %v1770_v45 = vor.u32 1.1754944e-38, %v1769_v47  ;;  %vm1768_vm2 = vcmp.eq.f32.partialorder %v1767_v49, 8.507059e+37 }
0x1537   :  { %450 = vperm.xlu0 %2512, %v433_v37  }
0x1539   :  { %v2647_v43 = vpop.eup %2646 }
0x153a   :  { %v1759_v44 = vmul.f32 %v2647_v43, %v1757_v42  ;;  %vm1764_vm15 = vweird.f32 %v2647_v43 }
0x153b   :  { %vm1765_vm1 = vmor %vm1763_vm6, %vm1764_vm15 }
0x153c   :  { %v1760_v15 = vsub.f32 1.0, %v1759_v44 }
0x153e   :  { %v1761_v1 = vmul.f32 %v2647_v43, %v1760_v15 }
0x1540   :  { %v1762_v46 = vadd.f32 %v2647_v43, %v1761_v1  ;;  %v435_v1 = vld [vmem:[%s3783_s1 + $0x30] sm:$0xff] }
0x1542   :  { %v1766_v50 = vsel %vm1765_vm1, %v2647_v43, %v1762_v46 }
0x1543   :  { %v1771_v34 = vsel %vm1768_vm2, %v1770_v45, %v1766_v50 }
0x1544   :  { %v1774_v53 = vmul.f32 %v1771_v34, %v1721_v23 }
0x15a1   :  { %v1777_v51 = vpop.permute.xlu0 %1776 }
0x15a2   :  { %v1779_v52 = vmul.f32 %v1777_v51, %v1771_v34 }
0x15a4   :  { %1781 = vrot.lane.b32.xlu1 %v1779_v52, %s2997_s14 }
0x15a9   :  { %v451_v55 = vpop.permute.xlu0 %450 }
0x15aa   :  { %vm465_vm3 = vcmp.eq.s32.totalorder %v3310_v58, %v451_v55 }
0x15ab   :  { %v2235_v60 = vsel %vm465_vm3, 1.0, %v2996_v61 }
0x15ac   :  { %453 = vperm.xlu1 %2513, %v434_v0  }
0x1616   :  { %v1782_v54 = vpop.permute.xlu1 %1781 }
0x1617   :  { %v1784_v41 = vadd.f32 %v1782_v54, %v1774_v53 }
0x1619   :  { %2648 = vtanh.f32 %v1784_v41 }
0x161e   :  { %v454_v57 = vpop.permute.xlu1 %453 }
0x161f   :  { %v2649_v13 = vpop.eup %2648  ;;  %vm466_vm4 = vcmp.eq.s32.totalorder %v3310_v58, %v454_v57 }
0x1620   :  { %v2236_v62 = vsel %vm466_vm4, 1.0, %v2996_v61  ;;  %1787 = vrot.lane.b32.xlu2 %v2649_v13, %s2987_s29 }
0x1621   :  { %v487_v24 = vpack.c.bf16 %v2236_v62, %v2235_v60  ;;  %v436_v60 = vld [vmem:[%s3783_s1 + $0x38] sm:$0xff] }
0x1623   :  { %2409 = vmatmul.msk.bf16.gmra.mxu0 %vm1489_vm0, %v487_v24 }
0x167a   :  { %v1788_v25 = vpop.permute.xlu2 %1787 }
0x167b   :  { %v3665_v39 = vmul.f32 %v1788_v25, %v1771_v34 }
0x167d   :  { %v1796_v2 = vpack.c.bf16 %v3665_v39, %v3665_v39 }
0x167f   :  { %1798 = vrot.lane.b32.xlu2 %v1796_v2, %s2997_s14 }
0x16a0   :  { %v1521_v29 = vpop.f32.mrf.mxu0 }
0x16a1   :  { %v1522_v48 = vadd.f32 %v1521_v29, %v3605_v56 }
0x16a8   :  { %v1523_v38 = vpop.f32.mrf.mxu0 }
0x16a9   :  { %v1524_v40 = vadd.f32 %v1523_v38, %v3605_v56 }
0x16d9   :  { %v1799_v63 = vpop.permute.xlu2 %1798 }
0x16da   :  { %2427 = vmatmul.msk.bf16.vlgmr.msra.gmra.mxu1 %vm1489_vm0, %v1799_v63 }
0x1757   :  { %v1812_v4 = vpop.f32.mrf.mxu1 }
0x1758   :  { %v1816_v3 = vadd.f32 %v1812_v4, %v1522_v48 }
0x175a   :  { %2650 = vtanh.f32 %v1816_v3  ;;  %v2428_v9 = vmul.f32 -1.442695, %v1816_v3 }
0x175c   :  { %2652 = vpow2.f32 %v2428_v9 }
0x175f   :  { %v1814_v6 = vpop.f32.mrf.mxu1 }
0x1760   :  { %v2651_v8 = vpop.eup %2650 }
0x1761   :  { %1839 = vrot.lane.b32.xlu0 %v2651_v8, %s2987_s29 }
0x1762   :  { %v2653_v5 = vpop.eup %2652 }
0x1763   :  { %v1820_v10 = vadd.f32 1.0, %v2653_v5 }
0x1765   :  { %2654 = vrcp.f32 %v1820_v10  ;;  %v1832_v19 = vand.u32 2147483648, %v1820_v10  ;;  %vm1826_vm7 = vweird.f32 %v1820_v10  ;;  %v1830_v20 = vand.u32 2147483647, %v1820_v10 }
0x1767   :  { %v1833_v23 = vor.u32 1.1754944e-38, %v1832_v19  ;;  %vm1831_vm9 = vcmp.eq.f32.partialorder %v1830_v20, 8.507059e+37 }
0x176b   :  { %v2655_v11 = vpop.eup %2654 }
0x176c   :  { %v1822_v12 = vmul.f32 %v2655_v11, %v1820_v10  ;;  %vm1827_vm5 = vweird.f32 %v2655_v11 }
0x176d   :  { %vm1828_vm8 = vmor %vm1826_vm7, %vm1827_vm5 }
0x176e   :  { %v1823_v14 = vsub.f32 1.0, %v1822_v12 }
0x1770   :  { %v1824_v16 = vmul.f32 %v2655_v11, %v1823_v14 }
0x1772   :  { %v1825_v18 = vadd.f32 %v2655_v11, %v1824_v16 }
0x1774   :  { %v1829_v22 = vsel %vm1828_vm8, %v2655_v11, %v1825_v18 }
0x1775   :  { %v1834_v27 = vsel %vm1831_vm9, %v1833_v23, %v1829_v22 }
0x1776   :  { %v1837_v31 = vmul.f32 %v1834_v27, %v1784_v41 }
0x17d3   :  { %v1840_v26 = vpop.permute.xlu0 %1839 }
0x17d4   :  { %v1842_v30 = vmul.f32 %v1840_v26, %v1834_v27 }
0x17d6   :  { %1844 = vrot.lane.b32.xlu1 %v1842_v30, %s2997_s14 }
0x1848   :  { %v1845_v32 = vpop.permute.xlu1 %1844 }
0x1849   :  { %v1847_v33 = vadd.f32 %v1845_v32, %v1837_v31 }
0x184b   :  { %2656 = vtanh.f32 %v1847_v33 }
0x1851   :  { %v2657_v35 = vpop.eup %2656 }
0x1852   :  { %1850 = vrot.lane.b32.xlu2 %v2657_v35, %s2987_s29 }
0x18ac   :  { %v1851_v36 = vpop.permute.xlu2 %1850 }
0x18ad   :  { %v3675_v7 = vmul.f32 %v1851_v36, %v1834_v27 }
0x18af   :  { %v1859_v17 = vpack.c.bf16 %v3675_v7, %v3675_v7 }
0x18b1   :  { %1861 = vrot.lane.b32.xlu0 %v1859_v17, %s2997_s14 }
0x1923   :  { %v1862_v37 = vpop.permute.xlu0 %1861 }
0x1924   :  { %2429 = vmatmul.msk.bf16.vlgmr.msrb.gmra.mxu2 %vm1489_vm0, %v1862_v37 }
0x19a7   :  { %v1875_v42 = vpop.f32.mrf.mxu2 }
0x19a8   :  { %v1879_v43 = vadd.f32 %v1875_v42, %v1524_v40 }
0x19aa   :  { %2658 = vtanh.f32 %v1879_v43  ;;  %v2430_v46 = vmul.f32 -1.442695, %v1879_v43 }
0x19ac   :  { %2660 = vpow2.f32 %v2430_v46 }
0x19af   :  { %v1877_v44 = vpop.f32.mrf.mxu2 }
0x19b0   :  { %v2659_v15 = vpop.eup %2658 }
0x19b1   :  { %1902 = vrot.lane.b32.xlu1 %v2659_v15, %s2987_s29 }
0x19b2   :  { %v2661_v47 = vpop.eup %2660 }
0x19b3   :  { %v1883_v49 = vadd.f32 1.0, %v2661_v47 }
0x19b5   :  { %2662 = vrcp.f32 %v1883_v49  ;;  %v1895_v0 = vand.u32 2147483648, %v1883_v49  ;;  %vm1889_vm11 = vweird.f32 %v1883_v49  ;;  %v1893_v53 = vand.u32 2147483647, %v1883_v49 }
0x19b7   :  { %v1896_v41 = vor.u32 1.1754944e-38, %v1895_v0  ;;  %vm1894_vm13 = vcmp.eq.f32.partialorder %v1893_v53, 8.507059e+37 }
0x19b9   :  { %456 = vperm.xlu1 %2513, %v435_v1  }
0x19bb   :  { %v2663_v50 = vpop.eup %2662 }
0x19bc   :  { %v1885_v45 = vmul.f32 %v2663_v50, %v1883_v49  ;;  %vm1890_vm10 = vweird.f32 %v2663_v50 }
0x19bd   :  { %vm1891_vm12 = vmor %vm1889_vm11, %vm1890_vm10 }
0x19be   :  { %v1886_v51 = vsub.f32 1.0, %v1885_v45 }
0x19c0   :  { %v1887_v34 = vmul.f32 %v2663_v50, %v1886_v51 }
0x19c2   :  { %v1888_v52 = vadd.f32 %v2663_v50, %v1887_v34 }
0x19c4   :  { %v1892_v54 = vsel %vm1891_vm12, %v2663_v50, %v1888_v52 }
0x19c5   :  { %v1897_v57 = vsel %vm1894_vm13, %v1896_v41, %v1892_v54  ;;  %v2491_v41 = vld [vmem:[#allocation15] sm:$0xff] }
0x19c6   :  { %v1900_v62 = vmul.f32 %v1897_v57, %v1847_v33 }
0x1a23   :  { %v1903_v55 = vpop.permute.xlu1 %1902 }
0x1a24   :  { %v1905_v13 = vmul.f32 %v1903_v55, %v1897_v57 }
0x1a26   :  { %1907 = vrot.lane.b32.xlu2 %v1905_v13, %s2997_s14 }
0x1a2b   :  { %v457_v2 = vpop.permute.xlu1 %456 }
0x1a2c   :  { %vm467_vm14 = vcmp.eq.s32.totalorder %v3310_v58, %v457_v2 }
0x1a2d   :  { %v2237_v48 = vsel %vm467_vm14, 1.0, %v2996_v61 }
0x1a2e   :  { %459 = vperm.xlu2 %2514, %v436_v60  }
0x1a80   :  { %v1908_v24 = vpop.permute.xlu2 %1907 }
0x1a81   :  { %v1910_v25 = vadd.f32 %v1908_v24, %v1900_v62 }
0x1a83   :  { %2664 = vtanh.f32 %v1910_v25 }
0x1a88   :  { %v460_v63 = vpop.permute.xlu2 %459 }
0x1a89   :  { %v2665_v29 = vpop.eup %2664  ;;  %vm468_vm15 = vcmp.eq.s32.totalorder %v3310_v58, %v460_v63 }
0x1a8a   :  { %v2238_v4 = vsel %vm468_vm15, 1.0, %v2996_v61  ;;  %1913 = vrot.lane.b32.xlu0 %v2665_v29, %s2987_s29 }
0x1a8b   :  { %v488_v3 = vpack.c.bf16 %v2238_v4, %v2237_v48 }
0x1a8d   :  { %2410 = vmatmul.msk.bf16.gmra.mxu0 %vm1489_vm0, %v488_v3 }
0x1afc   :  { %v1914_v6 = vpop.permute.xlu0 %1913 }
0x1afd   :  { %v1916_v8 = vmul.f32 %v1914_v6, %v1897_v57 }
0x1aff   :  { %v1922_v9 = vpack.c.bf16 %v1916_v8, %v1916_v8 }
0x1b01   :  { %1924 = vrot.lane.b32.xlu0 %v1922_v9, %s2997_s14 }
0x1b0a   :  { %v1526_v10 = vpop.f32.mrf.mxu0 }
0x1b0b   :  { %v1527_v58 = vadd.f32 %v1526_v10, %v3605_v56 }
0x1b12   :  { %v1528_v50 = vpop.f32.mrf.mxu0 }
0x1b73   :  { %v1925_v5 = vpop.permute.xlu0 %1924 }
0x1b74   :  { %2431 = vmatmul.msk.bf16.vlgmr.msrb.gmra.mxu3 %vm1489_vm0, %v1925_v5 }
0x1bf7   :  { %v1938_v11 = vpop.f32.mrf.mxu3 }
0x1bf8   :  { %v1942_v12 = vadd.f32 %v1938_v11, %v1527_v58 }
0x1bfa   :  { %2666 = vtanh.f32 %v1942_v12  ;;  %v2432_v16 = vmul.f32 -1.442695, %v1942_v12 }
0x1bfc   :  { %2668 = vpow2.f32 %v2432_v16 }
0x1bff   :  { %v1940_v61 = vpop.f32.mrf.mxu3 }
0x1c00   :  { %v2667_v14 = vpop.eup %2666 }
0x1c01   :  { %1965 = vrot.lane.b32.xlu1 %v2667_v14, %s2987_s29  ;;  %v2519_v14 = vld [vmem:[#allocation17] ss:$0 sm:$0xff] }
0x1c02   :  { %v2669_v18 = vpop.eup %2668 }
0x1c03   :  { %v1946_v19 = vadd.f32 1.0, %v2669_v18 }
0x1c05   :  { %2670 = vrcp.f32 %v1946_v19  ;;  %v1958_v30 = vand.u32 2147483648, %v1946_v19  ;;  %vm1952_vm1 = vweird.f32 %v1946_v19  ;;  %v1956_v31 = vand.u32 2147483647, %v1946_v19 }
0x1c07   :  { %v1959_v33 = vor.u32 1.1754944e-38, %v1958_v30  ;;  %vm1957_vm3 = vcmp.eq.f32.partialorder %v1956_v31, 8.507059e+37 }
0x1c0b   :  { %v2671_v20 = vpop.eup %2670 }
0x1c0c   :  { %v1948_v22 = vmul.f32 %v2671_v20, %v1946_v19  ;;  %vm1953_vm6 = vweird.f32 %v2671_v20 }
0x1c0d   :  { %vm1954_vm2 = vmor %vm1952_vm1, %vm1953_vm6 }
0x1c0e   :  { %v1949_v23 = vsub.f32 1.0, %v1948_v22 }
0x1c10   :  { %v1950_v26 = vmul.f32 %v2671_v20, %v1949_v23 }
0x1c12   :  { %v1951_v27 = vadd.f32 %v2671_v20, %v1950_v26 }
0x1c14   :  { %v1955_v32 = vsel %vm1954_vm2, %v2671_v20, %v1951_v27 }
0x1c15   :  { %v1960_v36 = vsel %vm1957_vm3, %v1959_v33, %v1955_v32 }
0x1c16   :  { %v1963_v37 = vmul.f32 %v1960_v36, %v1910_v25 }
0x1c73   :  { %v1966_v35 = vpop.permute.xlu1 %1965 }
0x1c74   :  { %v1968_v17 = vmul.f32 %v1966_v35, %v1960_v36 }
0x1c76   :  { %1970 = vrot.lane.b32.xlu2 %v1968_v17, %s2997_s14 }
0x1cd0   :  { %v1971_v38 = vpop.permute.xlu2 %1970 }
0x1cd1   :  { %v3701_v40 = vadd.f32 %v1971_v38, %v1963_v37 }
0x1cd3   :  { %2672 = vtanh.f32 %v3701_v40 }
0x1cd9   :  { %v2673_v42 = vpop.eup %2672 }
0x1cda   :  { %1976 = vrot.lane.b32.xlu0 %v2673_v42, %s2987_s29 }
0x1d4c   :  { %v1977_v43 = vpop.permute.xlu0 %1976 }
0x1d4d   :  { %v1979_v44 = vmul.f32 %v1977_v43, %v1960_v36 }
0x1d4f   :  { %v1985_v15 = vpack.c.bf16 %v1979_v44, %v1979_v44 }
0x1d51   :  { %1987 = vrot.lane.b32.xlu1 %v1985_v15, %s2997_s14 }
0x1d59   :  { %1603 = vrot.lane.b32.xlu1 %v3611_v21, %s2997_s14  ;;  %v1529_v21 = vadd.f32 %v1528_v50, %v3605_v56  ;;  %v2492_v56 = vld [vmem:[#allocation15 + $0x8] sm:$0xff] }
0x1d5a   :  { %2098 = vmatpush.bf16.msra.mxu2 %v2492_v56 }
0x1d5e   :  { %2099 = vmatpush.bf16.msra.mxu2 %v2491_v41 }
0x1d61   :  { %1729 = vrot.lane.b32.xlu1 %v3644_v28, %s2997_s14 }
0x1d69   :  { %1918 = vrot.lane.b32.xlu1 %v1916_v8, %s2997_s14 }
0x1dc3   :  { %v1988_v1 = vpop.permute.xlu1 %1987 }
0x1dc4   :  { %2433 = vmatmul.msk.bf16.vlgmr.msrb.gmra.mxu1 %vm1489_vm0, %v1988_v1 }
0x1dcb   :  { %v1604_v46 = vpop.permute.xlu1 %1603 }
0x1dcc   :  { %1606 = vst.msk [vmem:[#allocation2] sm:$0xff] %vm1489_vm0, %v1604_v46 }
0x1dd3   :  { %v1730_v47 = vpop.permute.xlu1 %1729  ;;  %v2048_v4 = vld [vmem:[#allocation2] sm:$0xff] }
0x1dd4   :  { %1732 = vst.msk [vmem:[#allocation2 + $0x10] sm:$0xff] %vm1489_vm0, %v1730_v47 }
0x1ddb   :  { %v1919_v49 = vpop.permute.xlu1 %1918  ;;  %v2050_v5 = vld [vmem:[#allocation2 + $0x10] sm:$0xff] }
0x1ddc   :  { %1921 = vst.msk [vmem:[#allocation2 + $0x28] sm:$0xff] %vm1489_vm0, %v1919_v49 }
0x1de3   :  { %v2053_v33 = vld [vmem:[#allocation2 + $0x28] sm:$0xff] }
0x1e41   :  { %v2001_v45 = vpop.f32.mrf.mxu1 }
0x1e42   :  { %v2005_v51 = vadd.f32 %v2001_v45, %v1529_v21 }
0x1e44   :  { %2674 = vtanh.f32 %v2005_v51  ;;  %v2434_v52 = vmul.f32 -1.442695, %v2005_v51 }
0x1e46   :  { %2676 = vpow2.f32 %v2434_v52 }
0x1e49   :  { %v2003_v28 = vpop.f32.mrf.mxu1 }
0x1e4a   :  { %v2675_v34 = vpop.eup %2674 }
0x1e4b   :  { %2028 = vrot.lane.b32.xlu2 %v2675_v34, %s2987_s29 }
0x1e4c   :  { %v2677_v0 = vpop.eup %2676 }
0x1e4d   :  { %v2009_v53 = vadd.f32 1.0, %v2677_v0 }
0x1e4f   :  { %2678 = vrcp.f32 %v2009_v53  ;;  %vm2015_vm5 = vweird.f32 %v2009_v53 }
0x1e53   :  { %1666 = vrot.lane.b32.xlu2 %v3634_v59, %s2997_s14  ;;  %v2021_v59 = vand.u32 2147483648, %v2009_v53 }
0x1e55   :  { %v2679_v54 = vpop.eup %2678  ;;  %v2022_v24 = vor.u32 1.1754944e-38, %v2021_v59 }
0x1e56   :  { %v2011_v55 = vmul.f32 %v2679_v54, %v2009_v53  ;;  %vm2016_vm4 = vweird.f32 %v2679_v54 }
0x1e57   :  { %vm2017_vm7 = vmor %vm2015_vm5, %vm2016_vm4 }
0x1e58   :  { %v2012_v57 = vsub.f32 1.0, %v2011_v55 }
0x1e5a   :  { %v2013_v13 = vmul.f32 %v2679_v54, %v2012_v57 }
0x1e5b   :  { %1792 = vrot.lane.b32.xlu2 %v3665_v39, %s2997_s14  ;;  %v2019_v39 = vand.u32 2147483647, %v2009_v53 }
0x1e5c   :  { %v2014_v60 = vadd.f32 %v2679_v54, %v2013_v13 }
0x1e5d   :  { %vm2020_vm8 = vcmp.eq.f32.partialorder %v2019_v39, 8.507059e+37 }
0x1e5e   :  { %v2018_v62 = vsel %vm2017_vm7, %v2679_v54, %v2014_v60 }
0x1e5f   :  { %v2023_v2 = vsel %vm2020_vm8, %v2022_v24, %v2018_v62 }
0x1e60   :  { %v2026_v58 = vmul.f32 %v2023_v2, %v3701_v40 }
0x1e63   :  { %1981 = vrot.lane.b32.xlu2 %v1979_v44, %s2997_s14 }
0x1ea5   :  { %v2029_v25 = vpop.permute.xlu2 %2028 }
0x1ea6   :  { %v2031_v63 = vmul.f32 %v2029_v25, %v2023_v2 }
0x1ea8   :  { %2033 = vrot.lane.b32.xlu0 %v2031_v63, %s2997_s14 }
0x1ead   :  { %v1667_v29 = vpop.permute.xlu2 %1666 }
0x1eae   :  { %1669 = vst.msk [vmem:[#allocation2 + $0x8] sm:$0xff] %vm1489_vm0, %v1667_v29 }
0x1eb5   :  { %v1793_v48 = vpop.permute.xlu2 %1792  ;;  %v2049_v3 = vld [vmem:[#allocation2 + $0x8] sm:$0xff] }
0x1eb6   :  { %1795 = vst.msk [vmem:[#allocation2 + $0x18] sm:$0xff] %vm1489_vm0, %v1793_v48  ;;  %v2056_v6 = vpack.c.bf16 %v2049_v3, %v2048_v4 }
0x1eb8   :  { %2443 = vmatmul.msk.bf16.vlgmr.msra.gmra.mxu2 %vm1489_vm0, %v2056_v6 }
0x1ebd   :  { %v1982_v8 = vpop.permute.xlu2 %1981  ;;  %v2051_v9 = vld [vmem:[#allocation2 + $0x18] sm:$0xff] }
0x1ebe   :  { %1984 = vst.msk [vmem:[#allocation2 + $0x30] sm:$0xff] %vm1489_vm0, %v1982_v8  ;;  %v2057_v10 = vpack.c.bf16 %v2051_v9, %v2050_v5 }
0x1ec5   :  { %v2054_v17 = vld [vmem:[#allocation2 + $0x30] sm:$0xff] }
0x1ec8   :  { %2444 = vmatmul.msk.bf16.gmra.mxu2 %vm1489_vm0, %v2057_v10 }
0x1f1a   :  { %v2034_v11 = vpop.permute.xlu0 %2033 }
0x1f1b   :  { %v2036_v12 = vadd.f32 %v2034_v11, %v2026_v58 }
0x1f1d   :  { %2680 = vtanh.f32 %v2036_v12 }
0x1f23   :  { %v2681_v61 = vpop.eup %2680 }
0x1f24   :  { %2039 = vrot.lane.b32.xlu0 %v2681_v61, %s2987_s29  ;;  %s2998_s29 = smov [#allocation19]  }
0x1f25   :  { %s2147_s1 = sshll.u32 %s2998_s29, 4  ;;  %s2148_s1 = int_to_ptr.vmem [resolvable:$true] %s2147_s1 }
0x1f26   :  { %2152 = dma.vmem_to_hbm [thread:$0]  %s2148_s1, 128, %s2150_s9, [#allocation20]  }
0x1f27   :  { %2163 = dma.vmem_to_hbm [thread:$0]  %s2159_s23, 128, %s2161_s25, [#allocation20]  }
0x1f2c   :  { %1855 = vrot.lane.b32.xlu0 %v3675_v7, %s2997_s14 }
0x1f3b   :  { %v2101_v16 = vpop.f32.mrf.mxu2 }
0x1f3c   :  { %v2102_v18 = vadd.f32 %v2519_v14, %v2101_v16 }
0x1f3e   :  { %2121 = vst [vmem:[#allocation18] sm:$0xff] %v2102_v18 }
0x1f43   :  { %v2103_v19 = vpop.f32.mrf.mxu2 }
0x1f44   :  { %v2104_v20 = vadd.f32 %v2519_v14, %v2103_v19 }
0x1f46   :  { %2122 = vst [vmem:[#allocation18 + $0x8] sm:$0xff] %v2104_v20 }
0x1f4b   :  { %v2106_v22 = vpop.f32.mrf.mxu2 }
0x1f4c   :  { %v2107_v23 = vadd.f32 %v2519_v14, %v2106_v22 }
0x1f4e   :  { %2123 = vst [vmem:[#allocation18 + $0x10] sm:$0xff] %v2107_v23 }
0x1f53   :  { %v2108_v26 = vpop.f32.mrf.mxu2 }
0x1f54   :  { %v2109_v27 = vadd.f32 %v2519_v14, %v2108_v26 }
0x1f56   :  { %2124 = vst [vmem:[#allocation18 + $0x18] sm:$0xff] %v2109_v27 }
0x1f96   :  { %v2040_v30 = vpop.permute.xlu0 %2039 }
0x1f97   :  { %v2042_v31 = vmul.f32 %v2040_v30, %v2023_v2 }
0x1f99   :  { %2044 = vrot.lane.b32.xlu0 %v2042_v31, %s2997_s14 }
0x1f9e   :  { %v1856_v32 = vpop.permute.xlu0 %1855 }
0x1f9f   :  { %1858 = vst.msk [vmem:[#allocation2 + $0x20] sm:$0xff] %vm1489_vm0, %v1856_v32 }
0x1fa6   :  { %v2052_v7 = vld [vmem:[#allocation2 + $0x20] sm:$0xff] }
0x1fa7   :  { %v2058_v35 = vpack.c.bf16 %v2053_v33, %v2052_v7 }
0x1fa9   :  { %2445 = vmatmul.msk.bf16.gmra.mxu2 %vm1489_vm0, %v2058_v35 }
0x200b   :  { %v2045_v36 = vpop.permute.xlu0 %2044 }
0x200c   :  { %2047 = vst.msk [vmem:[#allocation2 + $0x38] sm:$0xff] %vm1489_vm0, %v2045_v36 }
0x2013   :  { %v2055_v37 = vld [vmem:[#allocation2 + $0x38] sm:$0xff] }
0x2014   :  { %v2059_v38 = vpack.c.bf16 %v2055_v37, %v2054_v17 }
0x2016   :  { %2446 = vmatmul.msk.bf16.gmra.mxu2 %vm1489_vm0, %v2059_v38 }
0x202c   :  { %v2111_v40 = vpop.f32.mrf.mxu2 }
0x202d   :  { %v2112_v42 = vadd.f32 %v2519_v14, %v2111_v40 }
0x202f   :  { %2125 = vst [vmem:[#allocation18 + $0x20] sm:$0xff] %v2112_v42 }
0x2034   :  { %v2113_v43 = vpop.f32.mrf.mxu2 }
0x2035   :  { %v2114_v44 = vadd.f32 %v2519_v14, %v2113_v43 }
0x2037   :  { %2126 = vst [vmem:[#allocation18 + $0x28] sm:$0xff] %v2114_v44 }
0x2099   :  { %v2116_v15 = vpop.f32.mrf.mxu2 }
0x209a   :  { %v2117_v1 = vadd.f32 %v2519_v14, %v2116_v15 }
0x209c   :  { %2127 = vst [vmem:[#allocation18 + $0x30] sm:$0xff] %v2117_v1 }
0x20a1   :  { %v2118_v46 = vpop.f32.mrf.mxu2 }
0x20a2   :  { %v2119_v47 = vadd.f32 %v2519_v14, %v2118_v46 }
0x20a4   :  { %2128 = vst [vmem:[#allocation18 + $0x38] sm:$0xff] %v2119_v47 }
0x20a5   :  { %2141 = dma.vmem_to_hbm [thread:$0]  %s2134_s26, 1024, %s2136_s3, [#allocation5], %s3001_s21, %s3001_s21, %s3002_s10  }
0x20a6   :  { %2980 = dma.done.wait [#allocation5], 1024  }
0x20a7   :  { %2981 = vsyncadd [#allocation5], 4294966272 }
0x20a8   :  { %2982 = dma.done.wait [#allocation20], 256  }
0x20a9   :  { %2983 = vsyncadd [#allocation20], 4294967040 }
0x20aa   :  { %2176 = vsyncpa [#allocation4], 1 }
0x20ab   :  { %2177 = vsyncpa [#allocation7], 1 }
0x20ac   :  { %2178 = vsyncpa [#allocation10], 1 }
0x20ad   :  { %2179 = vsyncpa [#allocation13], 1 }
0x20ae   :  { %2180 = vsyncpa [#allocation16], 1 }
0x20af   :  { %2181 = vsyncpa [#allocation5], 1 }
0x20b0   :  { %2182 = vsyncpa [#allocation20], 1 }

</bundles_post_ra>
